<compile_context>
chip_gen: v7x
topology: tpu7x:2x2x1
jax: 0.10.0
libtpu: 0.0.40
codegen_flags: <defaults>
</compile_context>

<pallas_src>
import functools

import jax
import jax.numpy as jnp
from jax.experimental import pallas as pl
from jax.experimental.pallas import tpu as pltpu


def _fused_bayesian_kernel(x_ref, pw_ref, nw_ref, out_ref, *, num_layers, d_pad):
    """Fused forward of the whole Bayesian MLP for ALL Monte-Carlo samples.

    x_ref  : (B, Dp)                 input, zero-padded to Dp columns
    pw_ref : (L, 2, Dp+1, Dp)        [mu^T ; mu_b] and [sigma^T ; sigma_b], zero-padded
    nw_ref : (L, 2, S, Dp+1, Dp)     [eps^T ; eps_b] and [mask^T ; mask_b]
    out_ref: (S, B, Dp)              padded output (real logits in cols [:out_last])
    """
    S = out_ref.shape[0]
    B = x_ref.shape[0]

    # Same input for every Monte-Carlo sample; hoisted broadcast (once per call).
    h = jnp.broadcast_to(x_ref[...][None, :, :], (S, B, d_pad))

    for l in range(num_layers):
        mu_sl = pw_ref[l, 0]      # (Dp+1, Dp)
        sg_sl = pw_ref[l, 1]      # (Dp+1, Dp)
        eps_sl = nw_ref[l, 0]     # (S, Dp+1, Dp)
        msk_sl = nw_ref[l, 1]     # (S, Dp+1, Dp)

        # Sampled [weight^T ; bias] slab per sample.  Padded rows/cols have
        # mu = sigma = 0, so the sample is exactly 0 there regardless of noise.
        wfull = mu_sl * msk_sl + sg_sl * eps_sl          # (S, Dp+1, Dp)
        w = wfull[:, :d_pad, :]                          # (S, Dp, Dp)
        b = wfull[:, d_pad:d_pad + 1, :]                 # (S, 1, Dp)

        # F.linear (pre-transposed layout) batched over the sample axis.
        h = jnp.einsum('sbd,sde->sbe', h, w,
                       preferred_element_type=jnp.float32) + b
        if l < num_layers - 1:
            h = jnp.maximum(h, 0.0)

    out_ref[...] = h.astype(out_ref.dtype)


def bayesian_network_forward(x, pw, nw, out_features):
    """Run the fused Bayesian MLP for all Monte-Carlo samples in one pallas_call.

    x  : (B, in0) float32
    pw : (L, 2, Dp+1, Dp) packed parameters  (mu/sigma, bias in last row)
    nw : (L, 2, S, Dp+1, Dp) packed noise    (eps/mask, bias noise in last row)
    returns (S, B, out_features) float32
    """
    B, in0 = x.shape
    num_layers = pw.shape[0]
    d_pad = pw.shape[-1]
    S = nw.shape[2]

    # One-time zero-pad of the input to the padded feature width.
    x_pad = jnp.zeros((B, d_pad), jnp.float32).at[:, :in0].set(x)

    kernel = functools.partial(_fused_bayesian_kernel,
                               num_layers=num_layers, d_pad=d_pad)

    out_pad = pl.pallas_call(
        kernel,
        out_shape=jax.ShapeDtypeStruct((S, B, d_pad), jnp.float32),
        in_specs=[pl.BlockSpec(memory_space=pltpu.MemorySpace.VMEM)
                  for _ in range(3)],
        out_specs=pl.BlockSpec(memory_space=pltpu.MemorySpace.VMEM),
    )(x_pad, pw, nw)

    return out_pad[:, :, :out_features]


def init_bayesian_network(key, architecture):
    """Deterministic parameter init mirroring muParameter/rhoParameter (f32)."""
    params = []
    depth = len(architecture)
    for layer in range(depth - 1):
        in_f = architecture[layer]
        out_f = architecture[layer + 1]
        key, k1, k2, k3, k4 = jax.random.split(key, 5)
        bound = jnp.sqrt(1.0 / in_f)
        mu_w = jax.random.uniform(k1, (out_f, in_f), jnp.float32, -bound, bound)
        mu_b = jax.random.uniform(k2, (out_f,), jnp.float32, -bound, bound)
        rho_w = jax.random.uniform(k3, (out_f, in_f), jnp.float32, -3.0, -2.0)
        rho_b = jax.random.uniform(k4, (out_f,), jnp.float32, -3.0, -2.0)
        params.append((mu_w, rho_w, mu_b, rho_b))
    return params, key


def pack_params(params, d_pad):
    """softplus hoisted out of the kernel; all layers stacked into one padded slab.

    Layout per layer l: pw[l, 0] = [mu_w^T ; mu_b], pw[l, 1] = [sigma_w^T ; sigma_b]
    with the bias in row d_pad and zeros everywhere outside (in_f, out_f).
    """
    L = len(params)
    pw = jnp.zeros((L, 2, d_pad + 1, d_pad), jnp.float32)
    for l, (mu_w, rho_w, mu_b, rho_b) in enumerate(params):
        out_f, in_f = mu_w.shape
        sigma_w = jax.nn.softplus(rho_w)
        sigma_b = jax.nn.softplus(rho_b)
        pw = pw.at[l, 0, :in_f, :out_f].set(mu_w.T)
        pw = pw.at[l, 0, d_pad, :out_f].set(mu_b)
        pw = pw.at[l, 1, :in_f, :out_f].set(sigma_w.T)
        pw = pw.at[l, 1, d_pad, :out_f].set(sigma_b)
    return pw


def sample_noise(key, params, p, num_samples):
    """eps ~ N(0,1), mask ~ Bernoulli(p), sampled directly in (in_f, out_f)
    orientation (kernel layout); last layer uses p = 1."""
    num_layers = len(params)
    raw = []
    for layer, (mu_w, rho_w, mu_b, rho_b) in enumerate(params):
        key, k1, k2, k3, k4 = jax.random.split(key, 5)
        layer_p = 1.0 if layer == num_layers - 1 else p
        out_f, in_f = mu_w.shape
        eps_wT = jax.random.normal(k1, (num_samples, in_f, out_f), jnp.float32)
        eps_b = jax.random.normal(k2, (num_samples, out_f), jnp.float32)
        mask_wT = jax.random.bernoulli(
            k3, layer_p, (num_samples, in_f, out_f)).astype(jnp.float32)
        mask_b = jax.random.bernoulli(
            k4, layer_p, (num_samples, out_f)).astype(jnp.float32)
        raw.append((eps_wT, mask_wT, eps_b, mask_b))
    return raw, key


def pack_noise(raw_noise, d_pad):
    """Zero-pad and stack all layers' noise into one (L, 2, S, Dp+1, Dp) slab."""
    L = len(raw_noise)
    S = raw_noise[0][0].shape[0]
    nw = jnp.zeros((L, 2, S, d_pad + 1, d_pad), jnp.float32)
    for l, (eps_wT, mask_wT, eps_b, mask_b) in enumerate(raw_noise):
        _, in_f, out_f = eps_wT.shape
        nw = nw.at[l, 0, :, :in_f, :out_f].set(eps_wT)
        nw = nw.at[l, 0, :, d_pad, :out_f].set(eps_b)
        nw = nw.at[l, 1, :, :in_f, :out_f].set(mask_wT)
        nw = nw.at[l, 1, :, d_pad, :out_f].set(mask_b)
    return nw


def reference_forward(x, params, raw_noise):
    """Pure-JAX reference for correctness checks (same math, unpadded)."""
    num_layers = len(params)
    num_samples = raw_noise[0][0].shape[0]
    outs = []
    for s in range(num_samples):
        hidden = x
        for layer in range(num_layers):
            mu_w, rho_w, mu_b, rho_b = params[layer]
            eps_wT, mask_wT, eps_b, mask_b = raw_noise[layer]
            wT = mu_w.T * mask_wT[s] + jax.nn.softplus(rho_w).T * eps_wT[s]
            b = mu_b * mask_b[s] + jax.nn.softplus(rho_b) * eps_b[s]
            hidden = hidden @ wT + b
            if layer < num_layers - 1:
                hidden = jnp.maximum(hidden, 0.0)
        outs.append(hidden)
    return jnp.stack(outs, axis=0)


if __name__ == "__main__":
    # architecture ~ moons example: input dim, two hidden layers, output dim
    architecture = (4, 32, 32, 2)
    p_dropconnect = 0.7
    batch = 8
    num_samples = 8          # Monte-Carlo weight draws, all fused into one call
    d_pad = max(architecture)  # padded feature width shared by all layers

    key = jax.random.PRNGKey(0)
    params, key = init_bayesian_network(key, architecture)
    raw_noise, key = sample_noise(key, params, p_dropconnect, num_samples)

    key, kx = jax.random.split(key)
    x = jax.random.normal(kx, (batch, architecture[0]), jnp.float32)

    pw = pack_params(params, d_pad)
    nw = pack_noise(raw_noise, d_pad)

    out = bayesian_network_forward(x, pw, nw, architecture[-1])
    out = jax.block_until_ready(out)

    ref = reference_forward(x, params, raw_noise)
    assert out.shape == (num_samples, batch, architecture[-1])
    assert jnp.allclose(out, ref, atol=1e-4, rtol=1e-4), "mismatch vs reference"

    print("KERNEL_OK")
</pallas_src>

<mosaic_0001>
module attributes {stable_mosaic.version = 11 : i64} {
  func.func @_fused_bayesian_kernel(%arg0: memref<8x32xf32, #tpu.memory_space<vmem>>, %arg1: memref<3x2x33x32xf32, #tpu.memory_space<vmem>>, %arg2: memref<3x2x8x33x32xf32, #tpu.memory_space<vmem>>, %arg3: memref<8x8x32xf32, #tpu.memory_space<vmem>>) attributes {dimension_semantics = [], scalar_prefetch = 0 : i64, scratch_operands = 0 : i64, tpu.core_type = #tpu.core_type<tc>} {
    %c0 = arith.constant 0 : index
    %c0_0 = arith.constant 0 : index
    %0 = vector.load %arg0[%c0, %c0_0] : memref<8x32xf32, #tpu.memory_space<vmem>>, vector<8x32xf32>
    %1 = vector.shape_cast %0 : vector<8x32xf32> to vector<1x8x32xf32>
    %2 = vector.shape_cast %1 : vector<1x8x32xf32> to vector<1x8x32xf32>
    %3 = vector.broadcast %2 : vector<1x8x32xf32> to vector<8x8x32xf32>
    %c0_1 = arith.constant 0 : index
    %c0_2 = arith.constant 0 : index
    %c0_3 = arith.constant 0 : index
    %c0_4 = arith.constant 0 : index
    %4 = vector.load %arg1[%c0_1, %c0_2, %c0_3, %c0_4] : memref<3x2x33x32xf32, #tpu.memory_space<vmem>>, vector<1x1x33x32xf32>
    %5 = vector.shape_cast %4 : vector<1x1x33x32xf32> to vector<33x32xf32>
    %c0_5 = arith.constant 0 : index
    %c1 = arith.constant 1 : index
    %c0_6 = arith.constant 0 : index
    %c0_7 = arith.constant 0 : index
    %6 = vector.load %arg1[%c0_5, %c1, %c0_6, %c0_7] : memref<3x2x33x32xf32, #tpu.memory_space<vmem>>, vector<1x1x33x32xf32>
    %7 = vector.shape_cast %6 : vector<1x1x33x32xf32> to vector<33x32xf32>
    %c0_8 = arith.constant 0 : index
    %c0_9 = arith.constant 0 : index
    %c0_10 = arith.constant 0 : index
    %c0_11 = arith.constant 0 : index
    %c0_12 = arith.constant 0 : index
    %8 = vector.load %arg2[%c0_8, %c0_9, %c0_10, %c0_11, %c0_12] : memref<3x2x8x33x32xf32, #tpu.memory_space<vmem>>, vector<1x1x8x33x32xf32>
    %9 = vector.shape_cast %8 : vector<1x1x8x33x32xf32> to vector<8x33x32xf32>
    %c0_13 = arith.constant 0 : index
    %c1_14 = arith.constant 1 : index
    %c0_15 = arith.constant 0 : index
    %c0_16 = arith.constant 0 : index
    %c0_17 = arith.constant 0 : index
    %10 = vector.load %arg2[%c0_13, %c1_14, %c0_15, %c0_16, %c0_17] : memref<3x2x8x33x32xf32, #tpu.memory_space<vmem>>, vector<1x1x8x33x32xf32>
    %11 = vector.shape_cast %10 : vector<1x1x8x33x32xf32> to vector<8x33x32xf32>
    %12 = vector.shape_cast %5 : vector<33x32xf32> to vector<1x33x32xf32>
    %13 = vector.broadcast %12 : vector<1x33x32xf32> to vector<8x33x32xf32>
    %14 = arith.mulf %13, %11 : vector<8x33x32xf32>
    %15 = vector.shape_cast %7 : vector<33x32xf32> to vector<1x33x32xf32>
    %16 = vector.broadcast %15 : vector<1x33x32xf32> to vector<8x33x32xf32>
    %17 = arith.mulf %16, %9 : vector<8x33x32xf32>
    %18 = arith.addf %14, %17 : vector<8x33x32xf32>
    %19 = vector.extract_strided_slice %18 {offsets = [0, 0, 0], sizes = [8, 32, 32], strides = [1, 1, 1]} : vector<8x33x32xf32> to vector<8x32x32xf32>
    %20 = vector.extract_strided_slice %18 {offsets = [0, 32, 0], sizes = [8, 1, 32], strides = [1, 1, 1]} : vector<8x33x32xf32> to vector<8x1x32xf32>
    "tpu.trace_start"() <{level = 10 : i32, message = "sbd,sde->sbe"}> : () -> ()
    %cst = arith.constant dense<0.000000e+00> : vector<8x8x32xf32>
    %21 = tpu.matmul %3, %19, %cst {dimension_numbers = #tpu.dot_dimension_numbers<[2], [1], [1], [2], [0, 0, 0, 1, 1, 2], [0], [0]>} : vector<8x8x32xf32>, vector<8x32x32xf32>, vector<8x8x32xf32> -> vector<8x8x32xf32>
    "tpu.trace_stop"() : () -> ()
    %22 = vector.broadcast %20 : vector<8x1x32xf32> to vector<8x8x32xf32>
    %23 = arith.addf %21, %22 : vector<8x8x32xf32>
    %cst_18 = arith.constant 0.000000e+00 : f32
    %24 = vector.broadcast %cst_18 : f32 to vector<8x8x32xf32>
    %25 = arith.maximumf %23, %24 : vector<8x8x32xf32>
    %c1_19 = arith.constant 1 : index
    %c0_20 = arith.constant 0 : index
    %c0_21 = arith.constant 0 : index
    %c0_22 = arith.constant 0 : index
    %26 = vector.load %arg1[%c1_19, %c0_20, %c0_21, %c0_22] : memref<3x2x33x32xf32, #tpu.memory_space<vmem>>, vector<1x1x33x32xf32>
    %27 = vector.shape_cast %26 : vector<1x1x33x32xf32> to vector<33x32xf32>
    %c1_23 = arith.constant 1 : index
    %c1_24 = arith.constant 1 : index
    %c0_25 = arith.constant 0 : index
    %c0_26 = arith.constant 0 : index
    %28 = vector.load %arg1[%c1_23, %c1_24, %c0_25, %c0_26] : memref<3x2x33x32xf32, #tpu.memory_space<vmem>>, vector<1x1x33x32xf32>
    %29 = vector.shape_cast %28 : vector<1x1x33x32xf32> to vector<33x32xf32>
    %c1_27 = arith.constant 1 : index
    %c0_28 = arith.constant 0 : index
    %c0_29 = arith.constant 0 : index
    %c0_30 = arith.constant 0 : index
    %c0_31 = arith.constant 0 : index
    %30 = vector.load %arg2[%c1_27, %c0_28, %c0_29, %c0_30, %c0_31] : memref<3x2x8x33x32xf32, #tpu.memory_space<vmem>>, vector<1x1x8x33x32xf32>
    %31 = vector.shape_cast %30 : vector<1x1x8x33x32xf32> to vector<8x33x32xf32>
    %c1_32 = arith.constant 1 : index
    %c1_33 = arith.constant 1 : index
    %c0_34 = arith.constant 0 : index
    %c0_35 = arith.constant 0 : index
    %c0_36 = arith.constant 0 : index
    %32 = vector.load %arg2[%c1_32, %c1_33, %c0_34, %c0_35, %c0_36] : memref<3x2x8x33x32xf32, #tpu.memory_space<vmem>>, vector<1x1x8x33x32xf32>
    %33 = vector.shape_cast %32 : vector<1x1x8x33x32xf32> to vector<8x33x32xf32>
    %34 = vector.shape_cast %27 : vector<33x32xf32> to vector<1x33x32xf32>
    %35 = vector.broadcast %34 : vector<1x33x32xf32> to vector<8x33x32xf32>
    %36 = arith.mulf %35, %33 : vector<8x33x32xf32>
    %37 = vector.shape_cast %29 : vector<33x32xf32> to vector<1x33x32xf32>
    %38 = vector.broadcast %37 : vector<1x33x32xf32> to vector<8x33x32xf32>
    %39 = arith.mulf %38, %31 : vector<8x33x32xf32>
    %40 = arith.addf %36, %39 : vector<8x33x32xf32>
    %41 = vector.extract_strided_slice %40 {offsets = [0, 0, 0], sizes = [8, 32, 32], strides = [1, 1, 1]} : vector<8x33x32xf32> to vector<8x32x32xf32>
    %42 = vector.extract_strided_slice %40 {offsets = [0, 32, 0], sizes = [8, 1, 32], strides = [1, 1, 1]} : vector<8x33x32xf32> to vector<8x1x32xf32>
    "tpu.trace_start"() <{level = 10 : i32, message = "sbd,sde->sbe"}> : () -> ()
    %cst_37 = arith.constant dense<0.000000e+00> : vector<8x8x32xf32>
    %43 = tpu.matmul %25, %41, %cst_37 {dimension_numbers = #tpu.dot_dimension_numbers<[2], [1], [1], [2], [0, 0, 0, 1, 1, 2], [0], [0]>} : vector<8x8x32xf32>, vector<8x32x32xf32>, vector<8x8x32xf32> -> vector<8x8x32xf32>
    "tpu.trace_stop"() : () -> ()
    %44 = vector.broadcast %42 : vector<8x1x32xf32> to vector<8x8x32xf32>
    %45 = arith.addf %43, %44 : vector<8x8x32xf32>
    %cst_38 = arith.constant 0.000000e+00 : f32
    %46 = vector.broadcast %cst_38 : f32 to vector<8x8x32xf32>
    %47 = arith.maximumf %45, %46 : vector<8x8x32xf32>
    %c2 = arith.constant 2 : index
    %c0_39 = arith.constant 0 : index
    %c0_40 = arith.constant 0 : index
    %c0_41 = arith.constant 0 : index
    %48 = vector.load %arg1[%c2, %c0_39, %c0_40, %c0_41] : memref<3x2x33x32xf32, #tpu.memory_space<vmem>>, vector<1x1x33x32xf32>
    %49 = vector.shape_cast %48 : vector<1x1x33x32xf32> to vector<33x32xf32>
    %c2_42 = arith.constant 2 : index
    %c1_43 = arith.constant 1 : index
    %c0_44 = arith.constant 0 : index
    %c0_45 = arith.constant 0 : index
    %50 = vector.load %arg1[%c2_42, %c1_43, %c0_44, %c0_45] : memref<3x2x33x32xf32, #tpu.memory_space<vmem>>, vector<1x1x33x32xf32>
    %51 = vector.shape_cast %50 : vector<1x1x33x32xf32> to vector<33x32xf32>
    %c2_46 = arith.constant 2 : index
    %c0_47 = arith.constant 0 : index
    %c0_48 = arith.constant 0 : index
    %c0_49 = arith.constant 0 : index
    %c0_50 = arith.constant 0 : index
    %52 = vector.load %arg2[%c2_46, %c0_47, %c0_48, %c0_49, %c0_50] : memref<3x2x8x33x32xf32, #tpu.memory_space<vmem>>, vector<1x1x8x33x32xf32>
    %53 = vector.shape_cast %52 : vector<1x1x8x33x32xf32> to vector<8x33x32xf32>
    %c2_51 = arith.constant 2 : index
    %c1_52 = arith.constant 1 : index
    %c0_53 = arith.constant 0 : index
    %c0_54 = arith.constant 0 : index
    %c0_55 = arith.constant 0 : index
    %54 = vector.load %arg2[%c2_51, %c1_52, %c0_53, %c0_54, %c0_55] : memref<3x2x8x33x32xf32, #tpu.memory_space<vmem>>, vector<1x1x8x33x32xf32>
    %55 = vector.shape_cast %54 : vector<1x1x8x33x32xf32> to vector<8x33x32xf32>
    %56 = vector.shape_cast %49 : vector<33x32xf32> to vector<1x33x32xf32>
    %57 = vector.broadcast %56 : vector<1x33x32xf32> to vector<8x33x32xf32>
    %58 = arith.mulf %57, %55 : vector<8x33x32xf32>
    %59 = vector.shape_cast %51 : vector<33x32xf32> to vector<1x33x32xf32>
    %60 = vector.broadcast %59 : vector<1x33x32xf32> to vector<8x33x32xf32>
    %61 = arith.mulf %60, %53 : vector<8x33x32xf32>
    %62 = arith.addf %58, %61 : vector<8x33x32xf32>
    %63 = vector.extract_strided_slice %62 {offsets = [0, 0, 0], sizes = [8, 32, 32], strides = [1, 1, 1]} : vector<8x33x32xf32> to vector<8x32x32xf32>
    %64 = vector.extract_strided_slice %62 {offsets = [0, 32, 0], sizes = [8, 1, 32], strides = [1, 1, 1]} : vector<8x33x32xf32> to vector<8x1x32xf32>
    "tpu.trace_start"() <{level = 10 : i32, message = "sbd,sde->sbe"}> : () -> ()
    %cst_56 = arith.constant dense<0.000000e+00> : vector<8x8x32xf32>
    %65 = tpu.matmul %47, %63, %cst_56 {dimension_numbers = #tpu.dot_dimension_numbers<[2], [1], [1], [2], [0, 0, 0, 1, 1, 2], [0], [0]>} : vector<8x8x32xf32>, vector<8x32x32xf32>, vector<8x8x32xf32> -> vector<8x8x32xf32>
    "tpu.trace_stop"() : () -> ()
    %66 = vector.broadcast %64 : vector<8x1x32xf32> to vector<8x8x32xf32>
    %67 = arith.addf %65, %66 : vector<8x8x32xf32>
    %c0_57 = arith.constant 0 : index
    %c0_58 = arith.constant 0 : index
    %c0_59 = arith.constant 0 : index
    %68 = vector.load %arg3[%c0_57, %c0_58, %c0_59] : memref<8x8x32xf32, #tpu.memory_space<vmem>>, vector<8x8x32xf32>
    tpu.vector_store %arg3[%c0_57, %c0_58, %c0_59], %67 {strides = array<i32>} : memref<8x8x32xf32, #tpu.memory_space<vmem>>, vector<8x8x32xf32>,
    return
  }
}

</mosaic_0001>

<bundles_post_ra>
// kernel: tpu_custom_call.1
= control target key start
LH: loop header
LB: loop body
LE: loop exit
PB: predicated region body
PF: predicated region fallthrough
CT: control target
= control target key end

     0   :  { %v3331_v3 = vmov 0.0|0.0   ;;  %vm3332_vm0 = vmmov 0   ;;  %v3333_v12 = vmov 0.0   ;;  %vm260_vm1 = vcmask 261120   ;;  %s4743_s0 = inlined_call_operand.vmem [shape: f32[8,32], index: 0, kind: input, shape index: {}]   ;;  %s4744_s1 = inlined_call_operand.vmem [shape: f32[3,2,33,32], index: 1, kind: input, shape index: {}]   ;;  %s4745_s2 = inlined_call_operand.vmem [shape: f32[3,2,8,33,32], index: 2, kind: input, shape index: {}]   ;;  %s4746_s3 = inlined_call_operand.hbm [shape: f32[8,8,32], index: 3, kind: output, shape index: {}]  }
   0x1   :  { %v3360_v0 = vld [vmem:[%s4744_s1] sm:$0xff]  ;;  %v3365_v1 = vld [vmem:[%s4744_s1 + $0x8] sm:$0xff]  ;;  %3157 = vmatprep.subr.bf16.mxu0 %v3331_v3  ;;  %3163 = vmatprep.subr.bf16.mxu1 %v3331_v3  ;;  %v3377_v4 = vld [vmem:[%s4744_s1 + $0x30] sm:$0xff] }
   0x2   :  { %v3370_v2 = vld [vmem:[%s4744_s1 + $0x28] sm:$0xff]  ;;  %v27_v5 = vld [vmem:[%s4745_s2] sm:$0xff]  ;;  %2901 = vmatprep.mubr.msk.f32.mxu0 %vm3332_vm0, %v3333_v12  ;;  %2912 = vmatprep.mubr.msk.f32.mxu1 %vm3332_vm0, %v3333_v12  ;;  %v33_v15 = vld [vmem:[%s4745_s2 + $0x30] sm:$0xff] }
   0x3   :  { %v28_v6 = vld [vmem:[%s4745_s2 + $0x8] sm:$0xff]  ;;  %v2529_v7 = vld [vmem:[%s4745_s2 + $0x140] sm:$0xff]  ;;  %v148_v9 = vmul.f32 %v3370_v2, %v27_v5  ;;  %v2535_v17 = vld [vmem:[%s4745_s2 + $0x170] sm:$0xff]  ;;  %v154_v21 = vmul.f32 %v3377_v4, %v33_v15 }
   0x4   :  { %v2530_v8 = vld [vmem:[%s4745_s2 + $0x148] sm:$0xff]  ;;  %v149_v10 = vmul.f32 %v3377_v4, %v28_v6  ;;  %v108_v13 = vmul.f32 %v2529_v7, %v3360_v0  ;;  %v114_v20 = vmul.f32 %v2535_v17, %v3365_v1  ;;  %v3418_v22 = vld [vmem:[%s4744_s1 + $0x10] sm:$0xff]  ;;  %v3423_v23 = vld [vmem:[%s4744_s1 + $0x18] sm:$0xff] }
   0x5   :  { %v32_v11 = vld [vmem:[%s4745_s2 + $0x28] sm:$0xff]  ;;  %v109_v14 = vmul.f32 %v2530_v8, %v3365_v1  ;;  %v3428_v24 = vld [vmem:[%s4744_s1 + $0x38] sm:$0xff]  ;;  %v3433_v27 = vld [vmem:[%s4744_s1 + $0x40] sm:$0xff] }
   0x6   :  { %v2534_v16 = vld [vmem:[%s4745_s2 + $0x168] sm:$0xff]  ;;  %v153_v18 = vmul.f32 %v3370_v2, %v32_v11  ;;  %v188_v25 = vadd.f32 %v148_v9, %v108_v13  ;;  %v29_v28 = vld [vmem:[%s4745_s2 + $0x10] sm:$0xff]  ;;  %v30_v29 = vld [vmem:[%s4745_s2 + $0x18] sm:$0xff]  ;;  %v194_v31 = vadd.f32 %v154_v21, %v114_v20 }
   0x7   :  { %v113_v19 = vmul.f32 %v2534_v16, %v3360_v0  ;;  %v189_v26 = vadd.f32 %v149_v10, %v109_v14  ;;  %v2531_v32 = vld [vmem:[%s4745_s2 + $0x150] sm:$0xff]  ;;  %v2532_v33 = vld [vmem:[%s4745_s2 + $0x158] sm:$0xff]  ;;  %v150_v34 = vmul.f32 %v3428_v24, %v29_v28  ;;  %v151_v35 = vmul.f32 %v3433_v27, %v30_v29  ;;  %v35_v40 = vld [vmem:[%s4745_s2 + $0x40] sm:$0xff] }
   0x8   :  { %v34_v36 = vld [vmem:[%s4745_s2 + $0x38] sm:$0xff]  ;;  %v110_v38 = vmul.f32 %v2531_v32, %v3418_v22  ;;  %v111_v39 = vmul.f32 %v2532_v33, %v3423_v23  ;;  %v2537_v42 = vld [vmem:[%s4745_s2 + $0x180] sm:$0xff]  ;;  %v156_v47 = vmul.f32 %v3433_v27, %v35_v40  ;;  %v37_v48 = vld [vmem:[%s4745_s2 + $0x50] sm:$0xff] }
   0x9   :  { %v193_v30 = vadd.f32 %v153_v18, %v113_v19  ;;  %v3158_v37 = vpack.c.bf16 %v189_v26, %v188_v25  ;;  %v2536_v41 = vld [vmem:[%s4745_s2 + $0x178] sm:$0xff]  ;;  %v155_v43 = vmul.f32 %v3428_v24, %v34_v36  ;;  %v116_v46 = vmul.f32 %v2537_v42, %v3423_v23  ;;  %v2539_v52 = vld [vmem:[%s4745_s2 + $0x190] sm:$0xff]  ;;  %v43_v60 = vld [vmem:[%s4745_s2 + $0x80] sm:$0xff] }
   0xa   :  { %v115_v45 = vmul.f32 %v2536_v41, %v3418_v22  ;;  %v38_v49 = vld [vmem:[%s4745_s2 + $0x58] sm:$0xff]  ;;  %v190_v50 = vadd.f32 %v150_v34, %v110_v38  ;;  %v191_v51 = vadd.f32 %v151_v35, %v111_v39  ;;  %v158_v54 = vmul.f32 %v3370_v2, %v37_v48  ;;  %v2545_v62 = vld [vmem:[%s4745_s2 + $0x1c0] sm:$0xff]  ;;  %v40_v9 = vld [vmem:[%s4745_s2 + $0x68] sm:$0xff] }
   0xb   :  { %v3164_v44 = vpack.c.bf16 %v194_v31, %v193_v30  ;;  %3159 = vmatpush3.bf16.msra.mxu0 %v3158_v37  ;;  %v2540_v53 = vld [vmem:[%s4745_s2 + $0x198] sm:$0xff]  ;;  %v159_v55 = vmul.f32 %v3377_v4, %v38_v49  ;;  %v196_v58 = vadd.f32 %v156_v47, %v116_v46  ;;  %v118_v59 = vmul.f32 %v2539_v52, %v3360_v0  ;;  %v39_v8 = vld [vmem:[%s4745_s2 + $0x60] sm:$0xff]  ;;  %v2542_v17 = vld [vmem:[%s4745_s2 + $0x1a8] sm:$0xff] }
   0xc   :  { %v42_v56 = vld [vmem:[%s4745_s2 + $0x78] sm:$0xff]  ;;  %3160 = vmatprep.subr.bf16.mxu0 %v3331_v3  ;;  %v195_v57 = vadd.f32 %v155_v43, %v115_v45  ;;  %v3161_v63 = vpack.c.bf16 %v191_v51, %v190_v50  ;;  %v119_v5 = vmul.f32 %v2540_v53, %v3365_v1  ;;  %v124_v7 = vmul.f32 %v2545_v62, %v3365_v1  ;;  %v2541_v10 = vld [vmem:[%s4745_s2 + $0x1a0] sm:$0xff]  ;;  %v44_v18 = vld [vmem:[%s4745_s2 + $0x88] sm:$0xff] }
   0xd   :  { %3165 = vmatpush3.bf16.msra.mxu1 %v3164_v44  ;;  %v2544_v61 = vld [vmem:[%s4745_s2 + $0x1b8] sm:$0xff]  ;;  %v3511_v13 = vld [vmem:[%s4743_s0] sm:$0xff]  ;;  %v198_v14 = vadd.f32 %v158_v54, %v118_v59  ;;  %v163_v15 = vmul.f32 %v3370_v2, %v42_v56  ;;  %v164_v16 = vmul.f32 %v3377_v4, %v43_v60  ;;  %v120_v20 = vmul.f32 %v2541_v10, %v3418_v22  ;;  %v45_v26 = vld [vmem:[%s4745_s2 + $0x90] sm:$0xff] }
   0xe   :  { %3166 = vmatprep.subr.bf16.mxu1 %v3331_v3  ;;  %v123_v6 = vmul.f32 %v2544_v61, %v3360_v0  ;;  %v3167_v11 = vpack.c.bf16 %v196_v58, %v195_v57  ;;  %v199_v19 = vadd.f32 %v159_v55, %v119_v5  ;;  %v121_v21 = vmul.f32 %v2542_v17, %v3423_v23  ;;  %v2546_v28 = vld [vmem:[%s4745_s2 + $0x1c8] sm:$0xff]  ;;  %v2547_v29 = vld [vmem:[%s4745_s2 + $0x1d0] sm:$0xff]  ;;  %v47_v33 = vld [vmem:[%s4745_s2 + $0xa0] sm:$0xff] }
   0xf   :  { %3162 = vmatpush3.bf16.msra.mxu0 %v3161_v63  ;;  %v160_v25 = vmul.f32 %v3428_v24, %v39_v8  ;;  %v204_v31 = vadd.f32 %v164_v16, %v124_v7  ;;  %v161_v32 = vmul.f32 %v3433_v27, %v40_v9  ;;  %v2549_v34 = vld [vmem:[%s4745_s2 + $0x1e0] sm:$0xff]  ;;  %v2550_v35 = vld [vmem:[%s4745_s2 + $0x1e8] sm:$0xff]  ;;  %v125_v38 = vmul.f32 %v2546_v28, %v3418_v22  ;;  %v53_v50 = vld [vmem:[%s4745_s2 + $0xd0] sm:$0xff] }
  0x10   :  { %3169 = vmatprep.subr.bf16.mxu0 %v3331_v3  ;;  %v203_v30 = vadd.f32 %v163_v15, %v123_v6  ;;  %v3170_v36 = vpack.c.bf16 %v199_v19, %v198_v14  ;;  %v126_v39 = vmul.f32 %v2547_v29, %v3423_v23  ;;  %v165_v42 = vmul.f32 %v3428_v24, %v44_v18  ;;  %v48_v44 = vld [vmem:[%s4745_s2 + $0xa8] sm:$0xff]  ;;  %v2555_v51 = vld [vmem:[%s4745_s2 + $0x210] sm:$0xff]  ;;  %v2552_v57 = vld [vmem:[%s4745_s2 + $0x1f8] sm:$0xff] }
  0x11   :  { %3168 = vmatpush3.bf16.msra.mxu1 %v3167_v11  ;;  %v200_v37 = vadd.f32 %v160_v25, %v120_v20  ;;  %v201_v41 = vadd.f32 %v161_v32, %v121_v21  ;;  %v166_v43 = vmul.f32 %v3433_v27, %v45_v26  ;;  %v2554_v45 = vld [vmem:[%s4745_s2 + $0x208] sm:$0xff]  ;;  %v128_v46 = vmul.f32 %v2549_v34, %v3360_v0  ;;  %v49_v55 = vld [vmem:[%s4745_s2 + $0xb0] sm:$0xff]  ;;  %v50_v61 = vld [vmem:[%s4745_s2 + $0xb8] sm:$0xff] }
  0x12   :  { %3175 = vmatprep.subr.bf16.mxu1 %v3331_v3  ;;  %2902 = vmatmul.mubr.msk.f32.vlgmr.msra.gmra.mrb[0].mxu0 %vm260_vm1, %v3511_v13  ;;  %v3176_v40 = vpack.c.bf16 %v204_v31, %v203_v30  ;;  %v129_v47 = vmul.f32 %v2550_v35, %v3365_v1  ;;  %v168_v48 = vmul.f32 %v3370_v2, %v47_v33  ;;  %v52_v49 = vld [vmem:[%s4745_s2 + $0xc8] sm:$0xff]  ;;  %v2551_v56 = vld [vmem:[%s4745_s2 + $0x1f0] sm:$0xff]  ;;  %v2556_v7 = vld [vmem:[%s4745_s2 + $0x218] sm:$0xff] }
  0x13   :  { %3171 = vmatpush3.bf16.msra.mxu0 %v3170_v36  ;;  %v3173_v52 = vpack.c.bf16 %v201_v41, %v200_v37  ;;  %v205_v53 = vadd.f32 %v165_v42, %v125_v38  ;;  %v206_v54 = vadd.f32 %v166_v43, %v126_v39  ;;  %2923 = vmatprep.mubr.msk.f32.mxu0 %vm3332_vm0, %v3333_v12  ;;  %v2557_v8 = vld [vmem:[%s4745_s2 + $0x220] sm:$0xff]  ;;  %v54_v15 = vld [vmem:[%s4745_s2 + $0xd8] sm:$0xff]  ;;  %v57_v20 = vld [vmem:[%s4745_s2 + $0xf0] sm:$0xff] }
  0x14   :  { %2913 = vmatmul.mubr.msk.f32.vlgmr.msra.gmra.mrb[0].mxu1 %vm260_vm1, %v3511_v13  ;;  %3172 = vmatprep.subr.bf16.mxu0 %v3331_v3  ;;  %v169_v58 = vmul.f32 %v3377_v4, %v48_v44  ;;  %v208_v59 = vadd.f32 %v168_v48, %v128_v46  ;;  %v133_v60 = vmul.f32 %v2554_v45, %v3360_v0  ;;  %v55_v16 = vld [vmem:[%s4745_s2 + $0xe0] sm:$0xff]  ;;  %v2559_v21 = vld [vmem:[%s4745_s2 + $0x230] sm:$0xff]  ;;  %v2560_v25 = vld [vmem:[%s4745_s2 + $0x238] sm:$0xff] }
  0x15   :  { %3177 = vmatpush3.bf16.msra.mxu1 %v3176_v40  ;;  %v3179_v62 = vpack.c.bf16 %v206_v54, %v205_v53  ;;  %2934 = vmatprep.mubr.msk.f32.mxu1 %vm3332_vm0, %v3333_v12  ;;  %v134_v63 = vmul.f32 %v2555_v51, %v3365_v1  ;;  %v173_v5 = vmul.f32 %v3370_v2, %v52_v49  ;;  %v58_v35 = vld [vmem:[%s4745_s2 + $0xf8] sm:$0xff]  ;;  %v63_v41 = vld [vmem:[%s4745_s2 + $0x120] sm:$0xff]  ;;  %v2562_v48 = vld [vmem:[%s4745_s2 + $0x248] sm:$0xff] }
  0x16   :  { %3178 = vmatprep.subr.bf16.mxu1 %v3331_v3  ;;  %v174_v6 = vmul.f32 %v3377_v4, %v53_v50  ;;  %v209_v9 = vadd.f32 %v169_v58, %v129_v47  ;;  %v130_v10 = vmul.f32 %v2551_v56, %v3418_v22  ;;  %v131_v11 = vmul.f32 %v2552_v57, %v3423_v23  ;;  %v2564_v36 = vld [vmem:[%s4745_s2 + $0x258] sm:$0xff]  ;;  %v2565_v42 = vld [vmem:[%s4745_s2 + $0x260] sm:$0xff]  ;;  %v64_v53 = vld [vmem:[%s4745_s2 + $0x128] sm:$0xff] }
  0x17   :  { %3174 = vmatpush3.bf16.msra.mxu0 %v3173_v52  ;;  %v170_v14 = vmul.f32 %v3428_v24, %v49_v55  ;;  %v213_v17 = vadd.f32 %v173_v5, %v133_v60  ;;  %v171_v19 = vmul.f32 %v3433_v27, %v50_v61  ;;  %v135_v29 = vmul.f32 %v2556_v7, %v3418_v22  ;;  %v62_v40 = vld [vmem:[%s4745_s2 + $0x118] sm:$0xff]  ;;  %v59_v46 = vld [vmem:[%s4745_s2 + $0x100] sm:$0xff]  ;;  %v60_v52 = vld [vmem:[%s4745_s2 + $0x108] sm:$0xff] }
  0x18   :  { %3181 = vmatprep.subr.bf16.mxu0 %v3331_v3  ;;  %v214_v18 = vadd.f32 %v174_v6, %v134_v63  ;;  %v3182_v26 = vpack.c.bf16 %v209_v9, %v208_v59  ;;  %v136_v30 = vmul.f32 %v2557_v8, %v3423_v23  ;;  %v175_v33 = vmul.f32 %v3428_v24, %v54_v15  ;;  %v2561_v47 = vld [vmem:[%s4745_s2 + $0x240] sm:$0xff]  ;;  %v65_v54 = vld [vmem:[%s4745_s2 + $0x130] sm:$0xff]  ;;  %v2566_v58 = vld [vmem:[%s4745_s2 + $0x268] sm:$0xff] }
  0x19   :  { %3180 = vmatpush3.bf16.msra.mxu1 %v3179_v62  ;;  %v210_v28 = vadd.f32 %v170_v14, %v130_v10  ;;  %v211_v32 = vadd.f32 %v171_v19, %v131_v11  ;;  %v176_v34 = vmul.f32 %v3433_v27, %v55_v16  ;;  %v138_v37 = vmul.f32 %v2559_v21, %v3360_v0  ;;  %v2567_v59 = vld [vmem:[%s4745_s2 + $0x270] sm:$0xff]  ;;  %v3693_v62 = vld [vmem:[%s4744_s1 + $0x58] sm:$0xff] }
  0x1a   :  { %3187 = vmatprep.subr.bf16.mxu1 %v3331_v3  ;;  %2924 = vmatmul.mubr.msk.f32.vlgmr.msra.gmra.mrb[2].mxu0 %vm260_vm1, %v3511_v13  ;;  %v3188_v31 = vpack.c.bf16 %v214_v18, %v213_v17  ;;  %v139_v38 = vmul.f32 %v2560_v25, %v3365_v1  ;;  %v178_v39 = vmul.f32 %v3370_v2, %v57_v20  ;;  %v3685_v60 = vld [vmem:[%s4744_s1 + $0x50] sm:$0xff]  ;;  %v3698_v63 = vld [vmem:[%s4744_s1 + $0x78] sm:$0xff] }
  0x1b   :  { %3183 = vmatpush3.bf16.msra.mxu0 %v3182_v26  ;;  %v3185_v43 = vpack.c.bf16 %v211_v32, %v210_v28  ;;  %v215_v44 = vadd.f32 %v175_v33, %v135_v29  ;;  %v216_v45 = vadd.f32 %v176_v34, %v136_v30  ;;  %2945 = vmatprep.mubr.msk.f32.mxu0 %vm3332_vm0, %v3333_v12 }
  0x1c   :  { %2935 = vmatmul.mubr.msk.f32.vlgmr.msra.gmra.mrb[2].mxu1 %vm260_vm1, %v3511_v13  ;;  %3184 = vmatprep.subr.bf16.mxu0 %v3331_v3  ;;  %v179_v49 = vmul.f32 %v3377_v4, %v58_v35  ;;  %v218_v50 = vadd.f32 %v178_v39, %v138_v37  ;;  %v143_v51 = vmul.f32 %v2564_v36, %v3360_v0 }
  0x1d   :  { %3189 = vmatpush3.bf16.msra.mxu1 %v3188_v31  ;;  %v3191_v55 = vpack.c.bf16 %v216_v45, %v215_v44  ;;  %2956 = vmatprep.mubr.msk.f32.mxu1 %vm3332_vm0, %v3333_v12  ;;  %v144_v56 = vmul.f32 %v2565_v42, %v3365_v1  ;;  %v183_v0 = vmul.f32 %v3370_v2, %v62_v40 }
  0x1e   :  { %3190 = vmatprep.subr.bf16.mxu1 %v3331_v3  ;;  %v184_v57 = vmul.f32 %v3377_v4, %v63_v41  ;;  %v219_v61 = vadd.f32 %v179_v49, %v139_v38  ;;  %v140_v1 = vmul.f32 %v2561_v47, %v3418_v22  ;;  %v141_v2 = vmul.f32 %v2562_v48, %v3423_v23 }
  0x1f   :  { %3186 = vmatpush3.bf16.msra.mxu0 %v3185_v43  ;;  %v180_v4 = vmul.f32 %v3428_v24, %v59_v46 }
  0x20   :  { %8 = vsyncpa [#allocation3], 0  ;;  %3193 = vmatprep.subr.bf16.mxu0 %v3331_v3  ;;  %v223_v5 = vadd.f32 %v183_v0, %v143_v51  ;;  %v224_v6 = vadd.f32 %v184_v57, %v144_v56  ;;  %v181_v7 = vmul.f32 %v3433_v27, %v60_v52  ;;  %v2587_v8 = vld [vmem:[%s4745_s2 + $0x280] sm:$0xff]  ;;  %v2628_v10 = vld [vmem:[%s4745_s2 + $0x3c8] sm:$0xff]  ;;  %v3194_v11 = vpack.c.bf16 %v219_v61, %v218_v50 }
  0x21   :  { %3192 = vmatpush3.bf16.msra.mxu1 %v3191_v55  ;;  %v2627_v9 = vld [vmem:[%s4745_s2 + $0x3c0] sm:$0xff]  ;;  %v220_v14 = vadd.f32 %v180_v4, %v140_v1  ;;  %v145_v15 = vmul.f32 %v2566_v58, %v3418_v22  ;;  %v146_v16 = vmul.f32 %v2567_v59, %v3423_v23  ;;  %v185_v19 = vmul.f32 %v3428_v24, %v64_v53  ;;  %v2588_v22 = vld [vmem:[%s4745_s2 + $0x288] sm:$0xff]  ;;  %v2593_v28 = vld [vmem:[%s4745_s2 + $0x2b0] sm:$0xff] }
  0x22   :  { %3199 = vmatprep.subr.bf16.mxu1 %v3331_v3  ;;  %2946 = vmatmul.mubr.msk.f32.vlgmr.msra.gmra.mrb[4].mxu0 %vm260_vm1, %v3511_v13  ;;  %v3200_v17 = vpack.c.bf16 %v224_v6, %v223_v5  ;;  %v221_v18 = vadd.f32 %v181_v7, %v141_v2  ;;  %v186_v20 = vmul.f32 %v3433_v27, %v65_v54  ;;  %v3721_v21 = vld [vmem:[%s4744_s1 + $0x80] sm:$0xff]  ;;  %v2632_v23 = vld [vmem:[%s4745_s2 + $0x3e8] sm:$0xff]  ;;  %v2633_v29 = vld [vmem:[%s4745_s2 + $0x3f0] sm:$0xff] }
  0x23   :  { %3195 = vmatpush3.bf16.msra.mxu0 %v3194_v11  ;;  %v926_v24 = vmul.f32 %v2627_v9, %v3685_v60  ;;  %v927_v27 = vmul.f32 %v2628_v10, %v3693_v62  ;;  %v966_v25 = vmul.f32 %v2587_v8, %v3698_v63  ;;  %v2592_v26 = vld [vmem:[%s4745_s2 + $0x2a8] sm:$0xff]  ;;  %v225_v31 = vadd.f32 %v185_v19, %v145_v15  ;;  %v3769_v45 = vld [vmem:[%s4744_s1 + $0x60] sm:$0xff]  ;;  %v3784_v47 = vld [vmem:[%s4744_s1 + $0x90] sm:$0xff] }
  0x24   :  { %2957 = vmatmul.mubr.msk.f32.vlgmr.msra.gmra.mrb[4].mxu1 %vm260_vm1, %v3511_v13  ;;  %3196 = vmatprep.subr.bf16.mxu0 %v3331_v3  ;;  %v3197_v30 = vpack.c.bf16 %v221_v18, %v220_v14  ;;  %v226_v32 = vadd.f32 %v186_v20, %v146_v16  ;;  %v967_v33 = vmul.f32 %v2588_v22, %v3721_v21  ;;  %v3779_v46 = vld [vmem:[%s4744_s1 + $0x88] sm:$0xff]  ;;  %v2589_v48 = vld [vmem:[%s4745_s2 + $0x290] sm:$0xff]  ;;  %v2590_v49 = vld [vmem:[%s4745_s2 + $0x298] sm:$0xff] }
  0x25   :  { %3201 = vmatpush3.bf16.msra.mxu1 %v3200_v17  ;;  %2967 = vmatprep.mubr.msk.f32.mxu0 %vm3332_vm0, %v3333_v12  ;;  %v1006_v34 = vadd.f32 %v966_v25, %v926_v24  ;;  %v931_v35 = vmul.f32 %v2632_v23, %v3685_v60  ;;  %v932_v37 = vmul.f32 %v2633_v29, %v3693_v62  ;;  %v2629_v50 = vld [vmem:[%s4745_s2 + $0x3d0] sm:$0xff]  ;;  %v2630_v51 = vld [vmem:[%s4745_s2 + $0x3d8] sm:$0xff]  ;;  %v2595_v0 = vld [vmem:[%s4745_s2 + $0x2c0] sm:$0xff] }
  0x26   :  { %3202 = vmatprep.subr.bf16.mxu1 %v3331_v3  ;;  %v3203_v36 = vpack.c.bf16 %v226_v32, %v225_v31  ;;  %2978 = vmatprep.mubr.msk.f32.mxu1 %vm3332_vm0, %v3333_v12  ;;  %v971_v38 = vmul.f32 %v2592_v26, %v3698_v63  ;;  %v972_v39 = vmul.f32 %v2593_v28, %v3721_v21  ;;  %v2594_v54 = vld [vmem:[%s4745_s2 + $0x2b8] sm:$0xff]  ;;  %v2635_v58 = vld [vmem:[%s4745_s2 + $0x400] sm:$0xff]  ;;  %v2600_v11 = vld [vmem:[%s4745_s2 + $0x2e8] sm:$0xff] }
  0x27   :  { %3198 = vmatpush3.bf16.msra.mxu0 %v3197_v30  ;;  %v1007_v40 = vadd.f32 %v967_v33, %v927_v27  ;;  %v968_v52 = vmul.f32 %v2589_v48, %v3779_v46  ;;  %v969_v53 = vmul.f32 %v2590_v49, %v3784_v47  ;;  %v928_v55 = vmul.f32 %v2629_v50, %v3769_v45  ;;  %v2634_v57 = vld [vmem:[%s4745_s2 + $0x3f8] sm:$0xff]  ;;  %v2599_v10 = vld [vmem:[%s4745_s2 + $0x2e0] sm:$0xff]  ;;  %v2640_v15 = vld [vmem:[%s4745_s2 + $0x428] sm:$0xff] }
  0x28   :  { %3205 = vmatprep.subr.bf16.mxu0 %v3331_v3  ;;  %v1011_v41 = vadd.f32 %v971_v38, %v931_v35  ;;  %v1012_v42 = vadd.f32 %v972_v39, %v932_v37  ;;  %v973_v59 = vmul.f32 %v2594_v54, %v3779_v46  ;;  %v933_v61 = vmul.f32 %v2634_v57, %v3769_v45  ;;  %v2639_v14 = vld [vmem:[%s4745_s2 + $0x420] sm:$0xff]  ;;  %v2604_v16 = vld [vmem:[%s4745_s2 + $0x308] sm:$0xff]  ;;  %v2645_v18 = vld [vmem:[%s4745_s2 + $0x450] sm:$0xff] }
  0x29   :  { %3204 = vmatpush3.bf16.msra.mxu1 %v3203_v36  ;;  %v3206_v43 = vpack.c.bf16 %v1007_v40, %v1006_v34  ;;  %v974_v2 = vmul.f32 %v2595_v0, %v3784_v47  ;;  %v1008_v4 = vadd.f32 %v968_v52, %v928_v55  ;;  %v2644_v17 = vld [vmem:[%s4745_s2 + $0x448] sm:$0xff]  ;;  %v938_v19 = vmul.f32 %v2639_v14, %v3769_v45  ;;  %v2605_v22 = vld [vmem:[%s4745_s2 + $0x310] sm:$0xff]  ;;  %v2650_v36 = vld [vmem:[%s4745_s2 + $0x478] sm:$0xff] }
  0x2a   :  { %3211 = vmatprep.subr.bf16.mxu1 %v3331_v3  ;;  %2968 = vmatmul.mubr.msk.f32.vlgmr.msra.gmra.mrb[6].mxu0 %vm260_vm1, %v3511_v13  ;;  %v3212_v44 = vpack.c.bf16 %v1012_v42, %v1011_v41  ;;  %v1013_v6 = vadd.f32 %v973_v59, %v933_v61  ;;  %v978_v23 = vmul.f32 %v2599_v10, %v3779_v46  ;;  %v2609_v34 = vld [vmem:[%s4745_s2 + $0x330] sm:$0xff]  ;;  %v2610_v38 = vld [vmem:[%s4745_s2 + $0x338] sm:$0xff]  ;;  %v2655_v41 = vld [vmem:[%s4745_s2 + $0x4a0] sm:$0xff] }
  0x2b   :  { %3207 = vmatpush3.bf16.msra.mxu0 %v3206_v43  ;;  %2989 = vmatprep.mubr.msk.f32.mxu0 %vm3332_vm0, %v3333_v12  ;;  %v979_v24 = vmul.f32 %v2600_v11, %v3784_v47  ;;  %v943_v27 = vmul.f32 %v2644_v17, %v3769_v45  ;;  %v983_v26 = vmul.f32 %v2604_v16, %v3779_v46  ;;  %v2649_v35 = vld [vmem:[%s4745_s2 + $0x470] sm:$0xff]  ;;  %v2654_v39 = vld [vmem:[%s4745_s2 + $0x498] sm:$0xff]  ;;  %v2615_v48 = vld [vmem:[%s4745_s2 + $0x360] sm:$0xff] }
  0x2c   :  { %2979 = vmatmul.mubr.msk.f32.vlgmr.msra.gmra.mrb[6].mxu1 %vm260_vm1, %v3511_v13  ;;  %3208 = vmatprep.subr.bf16.mxu0 %v3331_v3  ;;  %v3774_v13 = vld [vmem:[%s4744_s1 + $0x68] sm:$0xff]  ;;  %v3851_v28 = vadd.f32 %v978_v23, %v938_v19  ;;  %v984_v30 = vmul.f32 %v2605_v22, %v3784_v47  ;;  %v2614_v40 = vld [vmem:[%s4745_s2 + $0x358] sm:$0xff]  ;;  %v948_v42 = vmul.f32 %v2649_v35, %v3769_v45  ;;  %v2659_v59 = vld [vmem:[%s4745_s2 + $0x4c0] sm:$0xff] }
  0x2d   :  { %3213 = vmatpush3.bf16.msra.mxu1 %v3212_v44  ;;  %3000 = vmatprep.mubr.msk.f32.mxu1 %vm3332_vm0, %v3333_v12  ;;  %v929_v56 = vmul.f32 %v2630_v51, %v3774_v13  ;;  %v934_v1 = vmul.f32 %v2635_v58, %v3774_v13  ;;  %v939_v20 = vmul.f32 %v2640_v15, %v3774_v13  ;;  %v2619_v58 = vld [vmem:[%s4745_s2 + $0x380] sm:$0xff]  ;;  %v2660_v61 = vld [vmem:[%s4745_s2 + $0x4c8] sm:$0xff]  ;;  %v2625_v10 = vld [vmem:[%s4745_s2 + $0x3b0] sm:$0xff] }
  0x2e   :  { %3214 = vmatprep.subr.bf16.mxu1 %v3331_v3  ;;  %v944_v25 = vmul.f32 %v2645_v18, %v3774_v13  ;;  %v3856_v31 = vadd.f32 %v983_v26, %v943_v27  ;;  %v949_v43 = vmul.f32 %v2650_v36, %v3774_v13  ;;  %v988_v44 = vmul.f32 %v2609_v34, %v3779_v46  ;;  %v2533_v27 = vld [vmem:[%s4745_s2 + $0x160] sm:$0x1]  ;;  %v2538_v26 = vld [vmem:[%s4745_s2 + $0x188] sm:$0x1] }
  0x2f   :  { %v1009_v5 = vadd.f32 %v969_v53, %v929_v56  ;;  %v1014_v7 = vadd.f32 %v974_v2, %v934_v1  ;;  %v3853_v29 = vadd.f32 %v979_v24, %v939_v20  ;;  %v989_v49 = vmul.f32 %v2610_v38, %v3784_v47  ;;  %v2620_v2 = vld [vmem:[%s4745_s2 + $0x388] sm:$0xff] }
  0x30   :  { %v3860_v33 = vadd.f32 %v984_v30, %v944_v25  ;;  %v953_v50 = vmul.f32 %v2654_v39, %v3769_v45  ;;  %v3893_v51 = vadd.f32 %v988_v44, %v948_v42  ;;  %v954_v52 = vmul.f32 %v2655_v41, %v3774_v13  ;;  %v36_v25 = vld [vmem:[%s4745_s2 + $0x48] sm:$0x1]  ;;  %v2597_v39 = vld [vmem:[%s4745_s2 + $0x2d0] sm:$0xff]  ;;  %v2638_v42 = vld [vmem:[%s4745_s2 + $0x418] sm:$0xff] }
  0x31   :  { %v3209_v8 = vpack.c.bf16 %v1009_v5, %v1008_v4  ;;  %v3215_v9 = vpack.c.bf16 %v1014_v7, %v1013_v6  ;;  %v3221_v32 = vpack.c.bf16 %v3853_v29, %v3851_v28  ;;  %v993_v53 = vmul.f32 %v2614_v40, %v3779_v46  ;;  %v2664_v4 = vld [vmem:[%s4745_s2 + $0x4e8] sm:$0xff]  ;;  %v2665_v6 = vld [vmem:[%s4745_s2 + $0x4f0] sm:$0xff]  ;;  %v2598_v40 = vld [vmem:[%s4745_s2 + $0x2d8] sm:$0xff] }
  0x32   :  { %v3227_v37 = vpack.c.bf16 %v3860_v33, %v3856_v31  ;;  %v3897_v54 = vadd.f32 %v989_v49, %v949_v43  ;;  %v994_v55 = vmul.f32 %v2615_v48, %v3784_v47  ;;  %v2624_v5 = vld [vmem:[%s4745_s2 + $0x3a8] sm:$0xff]  ;;  %v958_v7 = vmul.f32 %v2659_v59, %v3769_v45  ;;  %v2637_v41 = vld [vmem:[%s4745_s2 + $0x410] sm:$0xff]  ;;  %v2602_v43 = vld [vmem:[%s4745_s2 + $0x2f8] sm:$0xff] }
  0x33   :  { %3210 = vmatpush3.bf16.msra.mxu0 %v3209_v8  ;;  %3216 = vmatpush3.bf16.msra.mxu1 %v3215_v9  ;;  %v3900_v56 = vadd.f32 %v993_v53, %v953_v50  ;;  %v959_v8 = vmul.f32 %v2660_v61, %v3774_v13  ;;  %v998_v9 = vmul.f32 %v2619_v58, %v3779_v46  ;;  %v228_v24 = vlaneseq  ;;  %v2603_v44 = vld [vmem:[%s4745_s2 + $0x300] sm:$0xff]  ;;  %v2642_v49 = vld [vmem:[%s4745_s2 + $0x438] sm:$0xff]  ;;  %v2543_v58 = vld [vmem:[%s4745_s2 + $0x1b0] sm:$0x1] }
  0x34   :  { %3217 = vmatprep.subr.bf16.mxu0 %v3331_v3  ;;  %3223 = vmatprep.subr.bf16.mxu1 %v3331_v3  ;;  %v3233_v0 = vpack.c.bf16 %v3897_v54, %v3893_v51  ;;  %v3904_v57 = vadd.f32 %v994_v55, %v954_v52  ;;  %v999_v11 = vmul.f32 %v2620_v2, %v3784_v47  ;;  %v2643_v50 = vld [vmem:[%s4745_s2 + $0x440] sm:$0xff]  ;;  %v41_v52 = vld [vmem:[%s4745_s2 + $0x70] sm:$0x1]  ;;  %v46_v59 = vld [vmem:[%s4745_s2 + $0x98] sm:$0x1] }
  0x35   :  { %v963_v14 = vmul.f32 %v2664_v4, %v3769_v45  ;;  %v3937_v15 = vadd.f32 %v998_v9, %v958_v7  ;;  %v964_v16 = vmul.f32 %v2665_v6, %v3774_v13  ;;  %v1003_v17 = vmul.f32 %v2624_v5, %v3779_v46  ;;  %v3955_v13 = vld [vmem:[%s4744_s1 + $0x20] sm:$0x1]  ;;  %v3960_v46 = vld [vmem:[%s4744_s1 + $0x48] sm:$0x1]  ;;  %v2548_v61 = vld [vmem:[%s4745_s2 + $0x1d8] sm:$0x1] }
  0x36   :  { %v3239_v1 = vpack.c.bf16 %v3904_v57, %v3900_v56  ;;  %v3941_v18 = vadd.f32 %v999_v11, %v959_v8  ;;  %v1004_v19 = vmul.f32 %v2625_v10, %v3784_v47  ;;  %v31_v47 = vld [vmem:[%s4745_s2 + $0x20] sm:$0x1]  ;;  %v229_v30 = vshrl.u32 %v228_v24, 7 }
  0x37   :  { %v3944_v20 = vadd.f32 %v1003_v17, %v963_v14  ;;  %v112_v34 = vmul.f32 %v2533_v27, %v3955_v13  ;;  %v152_v35 = vmul.f32 %v3960_v46, %v31_v47  ;;  %v117_v36 = vmul.f32 %v2538_v26, %v3955_v13  ;;  %v2647_v24 = vld [vmem:[%s4745_s2 + $0x460] sm:$0xff]  ;;  %v2608_v27 = vld [vmem:[%s4745_s2 + $0x328] sm:$0xff] }
  0x38   :  { %v3245_v22 = vpack.c.bf16 %v3941_v18, %v3937_v15  ;;  %v3948_v23 = vadd.f32 %v1004_v19, %v964_v16  ;;  %v157_v38 = vmul.f32 %v3960_v46, %v36_v25  ;;  %v3996_v48 = vsub.s32 0, %v229_v30  ;;  %v2607_v19 = vld [vmem:[%s4745_s2 + $0x320] sm:$0xff]  ;;  %v2648_v25 = vld [vmem:[%s4745_s2 + $0x468] sm:$0xff]  ;;  %v4252_v15 = vld [vmem:[%s4744_s1 + $0xb0] sm:$0xff] }
  0x39   :  { %v192_v53 = vadd.f32 %v152_v35, %v112_v34  ;;  %v936_v2 = vmul.f32 %v2637_v41, %v3685_v60  ;;  %v937_v4 = vmul.f32 %v2638_v42, %v3693_v62  ;;  %v976_v5 = vmul.f32 %v2597_v39, %v3698_v63  ;;  %v2652_v26 = vld [vmem:[%s4745_s2 + $0x488] sm:$0xff]  ;;  %v2613_v39 = vld [vmem:[%s4745_s2 + $0x350] sm:$0xff]  ;;  %v4257_v18 = vld [vmem:[%s4744_s1 + $0xb8] sm:$0xff] }
  0x3a   :  { %v3251_v45 = vpack.c.bf16 %v3948_v23, %v3944_v20  ;;  %v197_v55 = vadd.f32 %v157_v38, %v117_v36  ;;  %v977_v6 = vmul.f32 %v2598_v40, %v3721_v21  ;;  %v941_v7 = vmul.f32 %v2642_v49, %v3685_v60  ;;  %v2612_v38 = vld [vmem:[%s4745_s2 + $0x348] sm:$0xff]  ;;  %v2653_v40 = vld [vmem:[%s4745_s2 + $0x490] sm:$0xff]  ;;  %v4262_v20 = vld [vmem:[%s4744_s1 + $0xd8] sm:$0xff] }
  0x3b   :  { %v942_v8 = vmul.f32 %v2643_v50, %v3693_v62  ;;  %v981_v9 = vmul.f32 %v2602_v43, %v3698_v63  ;;  %v982_v10 = vmul.f32 %v2603_v44, %v3721_v21  ;;  %v122_v11 = vmul.f32 %v2543_v58, %v3955_v13  ;;  %v2687_v23 = vld [vmem:[%s4745_s2 + $0x510] sm:$0xff] }
  0x3c   :  { %v162_v14 = vmul.f32 %v3960_v46, %v41_v52  ;;  %v127_v16 = vmul.f32 %v2548_v61, %v3955_v13  ;;  %v167_v17 = vmul.f32 %v3960_v46, %v46_v59  ;;  %v231_v47 = vrot.slane %v192_v53, %v3996_v48 }
  0x3d   :  { %v235_v30 = vrot.slane %v197_v55, %v3996_v48  ;;  %v1016_v34 = vadd.f32 %v976_v5, %v936_v2  ;;  %v1017_v35 = vadd.f32 %v977_v6, %v937_v4  ;;  %v1021_v36 = vadd.f32 %v981_v9, %v941_v7  ;;  %v2553_v6 = vld [vmem:[%s4745_s2 + $0x200] sm:$0x1] }
  0x3e   :  { %v1022_v41 = vadd.f32 %v982_v10, %v942_v8  ;;  %v202_v42 = vadd.f32 %v162_v14, %v122_v11  ;;  %v4054_v43 = vadd.f32 %v167_v17, %v127_v16  ;;  %v946_v44 = vmul.f32 %v2647_v24, %v3685_v60  ;;  %v51_v10 = vld [vmem:[%s4745_s2 + $0xc0] sm:$0x1]  ;;  %v2558_v11 = vld [vmem:[%s4745_s2 + $0x228] sm:$0x1] }
  0x3f   :  { %v947_v50 = vmul.f32 %v2648_v25, %v3693_v62  ;;  %v986_v52 = vmul.f32 %v2607_v19, %v3698_v63  ;;  %v987_v53 = vmul.f32 %v2608_v27, %v3721_v21  ;;  %v951_v55 = vmul.f32 %v2652_v26, %v3685_v60  ;;  %v56_v24 = vld [vmem:[%s4745_s2 + $0xe8] sm:$0x1]  ;;  %v2658_v27 = vld [vmem:[%s4745_s2 + $0x4b8] sm:$0xff] }
  0x40   :  { %v952_v2 = vmul.f32 %v2653_v40, %v3693_v62  ;;  %v991_v4 = vmul.f32 %v2612_v38, %v3698_v63  ;;  %v992_v5 = vmul.f32 %v2613_v39, %v3721_v21  ;;  %v3218_v9 = vpack.c.bf16 %v1017_v35, %v1016_v34  ;;  %v2617_v35 = vld [vmem:[%s4745_s2 + $0x370] sm:$0xff]  ;;  %v2662_v38 = vld [vmem:[%s4745_s2 + $0x4d8] sm:$0xff] }
  0x41   :  { %v3224_v16 = vpack.c.bf16 %v1022_v41, %v1021_v36  ;;  %v239_v17 = vrot.slane %v202_v42, %v3996_v48  ;;  %v243_v19 = vrot.slane %v4054_v43, %v3996_v48  ;;  %v4085_v26 = vadd.f32 %v986_v52, %v946_v44  ;;  %v2618_v36 = vld [vmem:[%s4745_s2 + $0x378] sm:$0xff]  ;;  %v2623_v44 = vld [vmem:[%s4745_s2 + $0x3a0] sm:$0xff] }
  0x42   :  { %v132_v34 = vmul.f32 %v2553_v6, %v3955_v13  ;;  %v1031_v39 = vadd.f32 %v991_v4, %v951_v55  ;;  %v1032_v40 = vadd.f32 %v992_v5, %v952_v2  ;;  %v172_v41 = vmul.f32 %v3960_v46, %v51_v10  ;;  %v2622_v43 = vld [vmem:[%s4745_s2 + $0x398] sm:$0xff]  ;;  %v2563_v6 = vld [vmem:[%s4745_s2 + $0x250] sm:$0x1] }
  0x43   :  { %v137_v42 = vmul.f32 %v2558_v11, %v3955_v13  ;;  %v996_v55 = vmul.f32 %v2617_v35, %v3698_v63  ;;  %v1001_v4 = vmul.f32 %v2622_v43, %v3698_v63  ;;  %v1002_v5 = vmul.f32 %v2623_v44, %v3721_v21  ;;  %v61_v10 = vld [vmem:[%s4745_s2 + $0x110] sm:$0x1]  ;;  %v2685_v35 = vld [vmem:[%s4745_s2 + $0x500] sm:$0xff] }
  0xe5   :  { %v330_v49 = vpop.f32.mrb[0].mxu0 }
  0xe6   :  { %v331_v58 = vadd.f32 %v330_v49, %v231_v47  ;;  %v2903_v61 = vpop.f32.mrb[1].mxu0  ;;  %v2657_v47 = vld [vmem:[%s4745_s2 + $0x4b0] sm:$0xff]  ;;  %v2663_v49 = vld [vmem:[%s4745_s2 + $0x4e0] sm:$0xff] }
  0xe7   :  { %v400_v59 = vpop.f32.mrb[0].mxu1  ;;  %v956_v52 = vmul.f32 %v2657_v47, %v3685_v60  ;;  %v962_v2 = vmul.f32 %v2663_v49, %v3693_v62  ;;  %v2691_v49 = vld [vmem:[%s4745_s2 + $0x530] sm:$0xff] }
  0xe8   :  { %v401_v7 = vadd.f32 %v400_v59, %v235_v30  ;;  %v2914_v8 = vpop.f32.mrb[1].mxu1  ;;  %v824_v14 = vmax.f32 %v331_v58, 0.0  ;;  %v4087_v30 = vadd.f32 %v987_v53, %v947_v50  ;;  %v177_v50 = vmul.f32 %v3960_v46, %v56_v24 }
  0xe9   :  { %v957_v53 = vmul.f32 %v2658_v27, %v3693_v62  ;;  %v997_v58 = vmul.f32 %v2618_v36, %v3721_v21  ;;  %v961_v59 = vmul.f32 %v2662_v38, %v3685_v60  ;;  %v212_v60 = vadd.f32 %v172_v41, %v132_v34  ;;  %v4168_v34 = vld [vmem:[%s4744_s1 + $0xc8] sm:$0xff]  ;;  %v2725_v38 = vld [vmem:[%s4745_s2 + $0x640] sm:$0xff] }
  0xea   :  { %v825_v25 = vmax.f32 %v401_v7, 0.0  ;;  %2990 = vmatmul.mubr.msk.f32.vlgmr.msra.gmra.mrb[8].mxu0 %vm260_vm1, %v824_v14  ;;  %v3230_v63 = vpack.c.bf16 %v4087_v30, %v4085_v26  ;;  %v3236_v21 = vpack.c.bf16 %v1032_v40, %v1031_v39  ;;  %v217_v14 = vadd.f32 %v177_v50, %v137_v42  ;;  %v4163_v30 = vld [vmem:[%s4744_s1 + $0xa8] sm:$0xff] }
  0xeb   :  { %3219 = vmatpush3.bf16.msra.mxu0 %v3218_v9  ;;  %3011 = vmatprep.mubr.msk.f32.mxu0 %vm3332_vm0, %v3333_v12  ;;  %v1036_v28 = vadd.f32 %v996_v55, %v956_v52  ;;  %v1037_v29 = vadd.f32 %v997_v58, %v957_v53  ;;  %v1041_v47 = vadd.f32 %v1001_v4, %v961_v59  ;;  %v2686_v36 = vld [vmem:[%s4745_s2 + $0x508] sm:$0xff]  ;;  %v2731_v52 = vld [vmem:[%s4745_s2 + $0x670] sm:$0xff] }
  0xec   :  { %3001 = vmatmul.mubr.msk.f32.vlgmr.msra.gmra.mrb[8].mxu1 %vm260_vm1, %v825_v25  ;;  %3220 = vmatprep.subr.bf16.mxu0 %v3331_v3  ;;  %v1042_v27 = vadd.f32 %v1002_v5, %v962_v2  ;;  %v182_v25 = vmul.f32 %v3960_v46, %v61_v10  ;;  %v247_v26 = vrot.slane %v212_v60, %v3996_v48  ;;  %v2726_v39 = vld [vmem:[%s4745_s2 + $0x648] sm:$0xff] }
  0xed   :  { %3225 = vmatpush3.bf16.msra.mxu1 %v3224_v16  ;;  %v470_v61 = vpop.f32.mrb[2].mxu0  ;;  %3022 = vmatprep.mubr.msk.f32.mxu1 %vm3332_vm0, %v3333_v12  ;;  %v66_v16 = vld [vmem:[%s4745_s2 + $0x138] sm:$0x1]  ;;  %v2690_v40 = vld [vmem:[%s4745_s2 + $0x528] sm:$0xff]  ;;  %v3242_v42 = vpack.c.bf16 %v1037_v29, %v1036_v28  ;;  %v1770_v10 = vmul.f32 %v2731_v52, %v4163_v30 }
  0xee   :  { %3226 = vmatprep.subr.bf16.mxu1 %v3331_v3  ;;  %v471_v7 = vadd.f32 %v470_v61, %v239_v17  ;;  %v2925_v9 = vpop.f32.mrb[3].mxu0  ;;  %v2568_v17 = vld [vmem:[%s4745_s2 + $0x278] sm:$0x1]  ;;  %v187_v33 = vmul.f32 %v3960_v46, %v66_v16  ;;  %v4175_v46 = vld [vmem:[%s4744_s1 + $0xd0] sm:$0xff]  ;;  %v3248_v43 = vpack.c.bf16 %v1042_v27, %v1041_v47  ;;  %v2730_v50 = vld [vmem:[%s4745_s2 + $0x668] sm:$0xff]  ;;  %v1804_v61 = vmul.f32 %v2685_v35, %v4168_v34 }
  0xef   :  { %v540_v8 = vpop.f32.mrb[2].mxu1  ;;  %3222 = vmatpush3.bf16.msra.mxu0 %v3221_v32  ;;  %v142_v32 = vmul.f32 %v2563_v6, %v3955_v13  ;;  %v147_v31 = vmul.f32 %v2568_v17, %v3955_v13  ;;  %v251_v13 = vrot.slane %v217_v14, %v3996_v48  ;;  %v1805_v2 = vmul.f32 %v2686_v36, %v4175_v46  ;;  %v2727_v47 = vld [vmem:[%s4745_s2 + $0x650] sm:$0xff]  ;;  %v2728_v27 = vld [vmem:[%s4745_s2 + $0x658] sm:$0xff]  ;;  %v2693_v35 = vld [vmem:[%s4745_s2 + $0x540] sm:$0xff] }
  0xf0   :  { %v541_v62 = vadd.f32 %v540_v8, %v243_v19  ;;  %v2936_v11 = vpop.f32.mrb[3].mxu1  ;;  %v826_v24 = vmax.f32 %v471_v7, 0.0  ;;  %3229 = vmatprep.subr.bf16.mxu0 %v3331_v3  ;;  %v1765_v7 = vmul.f32 %v2726_v39, %v4163_v30  ;;  %v1809_v8 = vmul.f32 %v2690_v40, %v4168_v34  ;;  %v2732_v36 = vld [vmem:[%s4745_s2 + $0x678] sm:$0xff] }
  0xf1   :  { %3228 = vmatpush3.bf16.msra.mxu1 %v3227_v37  ;;  %v4158_v37 = vld [vmem:[%s4744_s1 + $0xa0] sm:$0xff]  ;;  %v222_v44 = vadd.f32 %v182_v25, %v142_v32  ;;  %v227_v59 = vadd.f32 %v187_v33, %v147_v31  ;;  %v1810_v51 = vmul.f32 %v2691_v49, %v4175_v46  ;;  %v1806_v25 = vmul.f32 %v2687_v23, %v4262_v20  ;;  %v2692_v31 = vld [vmem:[%s4745_s2 + $0x538] sm:$0xff] }
  0xf2   :  { %v827_v19 = vmax.f32 %v541_v62, 0.0  ;;  %3235 = vmatprep.subr.bf16.mxu1 %v3331_v3  ;;  %3012 = vmatmul.mubr.msk.f32.vlgmr.msra.gmra.mrb[10].mxu0 %vm260_vm1, %v826_v24  ;;  %v1764_v6 = vmul.f32 %v2725_v38, %v4158_v37  ;;  %v1769_v60 = vmul.f32 %v2730_v50, %v4158_v37  ;;  %v1766_v33 = vmul.f32 %v2727_v47, %v4252_v15  ;;  %v2733_v38 = vld [vmem:[%s4745_s2 + $0x680] sm:$0xff] }
  0xf3   :  { %3231 = vmatpush3.bf16.msra.mxu0 %v3230_v63  ;;  %3033 = vmatprep.mubr.msk.f32.mxu0 %vm3332_vm0, %v3333_v12  ;;  %v259_v56 = vrot.slane %v227_v59, %v3996_v48  ;;  %v1850_v11 = vadd.f32 %v1810_v51, %v1770_v10  ;;  %v1811_v39 = vmul.f32 %v2692_v31, %v4262_v20  ;;  %v2737_v59 = vld [vmem:[%s4745_s2 + $0x6a0] sm:$0xff] }
  0xf4   :  { %3023 = vmatmul.mubr.msk.f32.vlgmr.msra.gmra.mrb[10].mxu1 %vm260_vm1, %v827_v19  ;;  %3232 = vmatprep.subr.bf16.mxu0 %v3331_v3  ;;  %v1844_v57 = vadd.f32 %v1804_v61, %v1764_v6  ;;  %v1849_v62 = vadd.f32 %v1809_v8, %v1769_v60  ;;  %v1771_v40 = vmul.f32 %v2732_v36, %v4252_v15  ;;  %v2738_v61 = vld [vmem:[%s4745_s2 + $0x6a8] sm:$0xff]  ;;  %v2703_v8 = vld [vmem:[%s4745_s2 + $0x590] sm:$0xff] }
  0xf5   :  { %3237 = vmatpush3.bf16.msra.mxu1 %v3236_v21  ;;  %v610_v41 = vpop.f32.mrb[4].mxu0  ;;  %3044 = vmatprep.mubr.msk.f32.mxu1 %vm3332_vm0, %v3333_v12  ;;  %v1776_v6 = vmul.f32 %v2737_v59, %v4252_v15 }
  0xf6   :  { %3238 = vmatprep.subr.bf16.mxu1 %v3331_v3  ;;  %v611_v53 = vadd.f32 %v610_v41, %v247_v26  ;;  %v2947_v58 = vpop.f32.mrb[5].mxu0  ;;  %v3260_v32 = vpack.c.bf16 %v1850_v11, %v1849_v62  ;;  %v1772_v41 = vmul.f32 %v2733_v38, %v4257_v18  ;;  %v1851_v49 = vadd.f32 %v1811_v39, %v1771_v40  ;;  %v2717_v39 = vld [vmem:[%s4745_s2 + $0x600] sm:$0xff] }
  0xf7   :  { %v680_v55 = vpop.f32.mrb[4].mxu1  ;;  %3234 = vmatpush3.bf16.msra.mxu0 %v3233_v0  ;;  %v255_v0 = vrot.slane %v222_v44, %v3996_v48  ;;  %v2698_v58 = vld [vmem:[%s4745_s2 + $0x568] sm:$0xff]  ;;  %v2757_v40 = vld [vmem:[%s4745_s2 + $0x740] sm:$0xff] }
  0xf8   :  { %v681_v4 = vadd.f32 %v680_v55, %v251_v13  ;;  %v2958_v5 = vpop.f32.mrb[5].mxu1  ;;  %v828_v9 = vmax.f32 %v611_v53, 0.0  ;;  %3241 = vmatprep.subr.bf16.mxu0 %v3331_v3  ;;  %v1767_v13 = vmul.f32 %v2728_v27, %v4257_v18  ;;  %v2697_v55 = vld [vmem:[%s4745_s2 + $0x560] sm:$0xff] }
  0xf9   :  { %3240 = vmatpush3.bf16.msra.mxu1 %v3239_v1  ;;  %v1845_v1 = vadd.f32 %v1805_v2, %v1765_v7  ;;  %v2702_v2 = vld [vmem:[%s4745_s2 + $0x588] sm:$0xff]  ;;  %v2743_v5 = vld [vmem:[%s4745_s2 + $0x6d0] sm:$0xff]  ;;  %v1777_v7 = vmul.f32 %v2738_v61, %v4257_v18 }
  0xfa   :  { %v829_v54 = vmax.f32 %v681_v4, 0.0  ;;  %3247 = vmatprep.subr.bf16.mxu1 %v3331_v3  ;;  %3034 = vmatmul.mubr.msk.f32.vlgmr.msra.gmra.mrb[12].mxu0 %vm260_vm1, %v828_v9  ;;  %v2742_v4 = vld [vmem:[%s4745_s2 + $0x6c8] sm:$0xff]  ;;  %v1816_v9 = vmul.f32 %v2697_v55, %v4262_v20  ;;  %v1782_v51 = vmul.f32 %v2743_v5, %v4257_v18  ;;  %v1836_v55 = vmul.f32 %v2717_v39, %v4262_v20 }
  0xfb   :  { %3243 = vmatpush3.bf16.msra.mxu0 %v3242_v42  ;;  %3055 = vmatprep.mubr.msk.f32.mxu0 %vm3332_vm0, %v3333_v12  ;;  %v3254_v28 = vpack.c.bf16 %v1845_v1, %v1844_v57  ;;  %v1781_v10 = vmul.f32 %v2742_v4, %v4252_v15 }
  0xfc   :  { %3045 = vmatmul.mubr.msk.f32.vlgmr.msra.gmra.mrb[12].mxu1 %vm260_vm1, %v829_v54  ;;  %3244 = vmatprep.subr.bf16.mxu0 %v3331_v3  ;;  %v1821_v54 = vmul.f32 %v2702_v2, %v4262_v20 }
  0xfd   :  { %3249 = vmatpush3.bf16.msra.mxu1 %v3248_v43  ;;  %v750_v63 = vpop.f32.mrb[6].mxu0  ;;  %3066 = vmatprep.mubr.msk.f32.mxu1 %vm3332_vm0, %v3333_v12  ;;  %v1846_v43 = vadd.f32 %v1806_v25, %v1766_v33 }
  0xfe   :  { %3250 = vmatprep.subr.bf16.mxu1 %v3331_v3  ;;  %v751_v21 = vadd.f32 %v750_v63, %v255_v0  ;;  %v2969_v16 = vpop.f32.mrb[7].mxu0  ;;  %v4334_v0 = vadd.f32 %v1816_v9, %v1776_v6  ;;  %v4339_v1 = vadd.f32 %v1821_v54, %v1781_v10  ;;  %v2707_v63 = vld [vmem:[%s4745_s2 + $0x5b0] sm:$0xff]  ;;  %v2631_v10 = vld [vmem:[%s4745_s2 + $0x3e0] sm:$0x1]  ;;  %v2636_v54 = vld [vmem:[%s4745_s2 + $0x408] sm:$0x1] }
  0xff   :  { %v820_v14 = vpop.f32.mrb[6].mxu1  ;;  %3246 = vmatpush3.bf16.msra.mxu0 %v3245_v22  ;;  %v4267_v22 = vld [vmem:[%s4744_s1 + $0xe0] sm:$0xff]  ;;  %v1826_v23 = vmul.f32 %v2707_v63, %v4262_v20 }
 0x100   :  { %v821_v17 = vadd.f32 %v820_v14, %v259_v56  ;;  %v2980_v24 = vpop.f32.mrb[7].mxu1  ;;  %v830_v29 = vmax.f32 %v751_v21, 0.0  ;;  %3253 = vmatprep.subr.bf16.mxu0 %v3331_v3  ;;  %v1812_v42 = vmul.f32 %v2693_v35, %v4267_v22  ;;  %v1817_v60 = vmul.f32 %v2698_v58, %v4267_v22  ;;  %v2747_v21 = vld [vmem:[%s4745_s2 + $0x6f0] sm:$0xff]  ;;  %v2748_v14 = vld [vmem:[%s4745_s2 + $0x6f8] sm:$0xff] }
 0x101   :  { %3252 = vmatpush3.bf16.msra.mxu1 %v3251_v45  ;;  %v2688_v45 = vld [vmem:[%s4745_s2 + $0x518] sm:$0xff]  ;;  %v1822_v57 = vmul.f32 %v2703_v8, %v4267_v22  ;;  %v2723_v58 = vld [vmem:[%s4745_s2 + $0x630] sm:$0xff] }
 0x102   :  { %v831_v19 = vmax.f32 %v821_v17, 0.0  ;;  %3259 = vmatprep.subr.bf16.mxu1 %v3331_v3  ;;  %3056 = vmatmul.mubr.msk.f32.vlgmr.msra.gmra.mrb[14].mxu0 %vm260_vm1, %v830_v29  ;;  %v1807_v26 = vmul.f32 %v2688_v45, %v4267_v22  ;;  %v1852_v50 = vadd.f32 %v1812_v42, %v1772_v41  ;;  %v4336_v56 = vadd.f32 %v1817_v60, %v1777_v7  ;;  %v2708_v17 = vld [vmem:[%s4745_s2 + $0x5b8] sm:$0xff]  ;;  %v2753_v29 = vld [vmem:[%s4745_s2 + $0x720] sm:$0xff]  ;;  %v2758_v41 = vld [vmem:[%s4745_s2 + $0x748] sm:$0xff] }
 0x103   :  { %3255 = vmatpush3.bf16.msra.mxu0 %v3254_v28  ;;  %3077 = vmatprep.mubr.msk.f32.mxu0 %vm3332_vm0, %v3333_v12  ;;  %v4343_v11 = vadd.f32 %v1822_v57, %v1782_v51  ;;  %v2752_v24 = vld [vmem:[%s4745_s2 + $0x718] sm:$0xff]  ;;  %v2713_v45 = vld [vmem:[%s4745_s2 + $0x5e0] sm:$0xff]  ;;  %v1827_v47 = vmul.f32 %v2708_v17, %v4267_v22  ;;  %v1842_v7 = vmul.f32 %v2723_v58, %v4267_v22  ;;  %v2596_v51 = vld [vmem:[%s4745_s2 + $0x2c8] sm:$0x1] }
 0x104   :  { %3067 = vmatmul.mubr.msk.f32.vlgmr.msra.gmra.mrb[14].mxu1 %vm260_vm1, %v831_v19  ;;  %3256 = vmatprep.subr.bf16.mxu0 %v3331_v3  ;;  %v1847_v44 = vadd.f32 %v1807_v26, %v1767_v13  ;;  %v3263_v53 = vpack.c.bf16 %v1852_v50, %v1851_v49  ;;  %v3269_v62 = vpack.c.bf16 %v4336_v56, %v4334_v0  ;;  %v2712_v28 = vld [vmem:[%s4745_s2 + $0x5d8] sm:$0xff]  ;;  %v2722_v49 = vld [vmem:[%s4745_s2 + $0x628] sm:$0xff]  ;;  %v2763_v50 = vld [vmem:[%s4745_s2 + $0x770] sm:$0xff] }
 0x105   :  { %3261 = vmatpush3.bf16.msra.mxu1 %v3260_v32  ;;  %3088 = vmatprep.mubr.msk.f32.mxu1 %vm3332_vm0, %v3333_v12  ;;  %v3275_v16 = vpack.c.bf16 %v4343_v11, %v4339_v1  ;;  %v1786_v32 = vmul.f32 %v2747_v21, %v4252_v15  ;;  %v1787_v19 = vmul.f32 %v2748_v14, %v4257_v18  ;;  %v2695_v17 = vld [vmem:[%s4745_s2 + $0x550] sm:$0xff]  ;;  %v2706_v58 = vld [vmem:[%s4745_s2 + $0x5a8] sm:$0xff] }
 0x106   :  { %3262 = vmatprep.subr.bf16.mxu1 %v3331_v3  ;;  %v3257_v52 = vpack.c.bf16 %v1847_v44, %v1846_v43  ;;  %v1791_v27 = vmul.f32 %v2752_v24, %v4252_v15  ;;  %v1792_v26 = vmul.f32 %v2753_v29, %v4257_v18  ;;  %v1831_v31 = vmul.f32 %v2712_v28, %v4262_v20  ;;  %v2718_v43 = vld [vmem:[%s4745_s2 + $0x608] sm:$0xff]  ;;  %v2696_v24 = vld [vmem:[%s4745_s2 + $0x558] sm:$0xff]  ;;  %v2735_v28 = vld [vmem:[%s4745_s2 + $0x690] sm:$0xff] }
 0x107   :  { %v4376_v25 = vadd.f32 %v1826_v23, %v1786_v32  ;;  %v4380_v33 = vadd.f32 %v1827_v47, %v1787_v19  ;;  %v1832_v13 = vmul.f32 %v2713_v45, %v4267_v22  ;;  %v2762_v44 = vld [vmem:[%s4745_s2 + $0x768] sm:$0xff]  ;;  %v1837_v59 = vmul.f32 %v2718_v43, %v4267_v22  ;;  %v2591_v22 = vld [vmem:[%s4745_s2 + $0x2a0] sm:$0x1]  ;;  %v2736_v29 = vld [vmem:[%s4745_s2 + $0x698] sm:$0xff] }
 0x108   :  { %3258 = vmatpush3.bf16.msra.mxu0 %v3257_v52  ;;  %v4383_v35 = vadd.f32 %v1831_v31, %v1791_v27  ;;  %v1796_v52 = vmul.f32 %v2757_v40, %v4252_v15  ;;  %v1801_v61 = vmul.f32 %v2762_v44, %v4252_v15  ;;  %v1802_v4 = vmul.f32 %v2763_v50, %v4257_v18  ;;  %v2700_v32 = vld [vmem:[%s4745_s2 + $0x578] sm:$0xff]  ;;  %v2701_v19 = vld [vmem:[%s4745_s2 + $0x580] sm:$0xff]  ;;  %v2641_v50 = vld [vmem:[%s4745_s2 + $0x430] sm:$0x1] }
 0x109   :  { %3264 = vmatpush3.bf16.msra.mxu1 %v3263_v53  ;;  %3265 = vmatprep.subr.bf16.mxu0 %v3331_v3  ;;  %v3281_v36 = vpack.c.bf16 %v4380_v33, %v4376_v25  ;;  %v4387_v38 = vadd.f32 %v1832_v13, %v1792_v26  ;;  %v1797_v53 = vmul.f32 %v2758_v41, %v4257_v18  ;;  %v4438_v18 = vld [vmem:[%s4744_s1 + $0x70] sm:$0x1]  ;;  %v2740_v23 = vld [vmem:[%s4745_s2 + $0x6b8] sm:$0xff]  ;;  %v2741_v45 = vld [vmem:[%s4745_s2 + $0x6c0] sm:$0xff] }
 0x10a   :  { %3271 = vmatprep.subr.bf16.mxu1 %v3331_v3  ;;  %v4420_v2 = vadd.f32 %v1836_v55, %v1796_v52  ;;  %v1841_v5 = vmul.f32 %v2722_v49, %v4262_v20  ;;  %v4431_v60 = vadd.f32 %v1842_v7, %v1802_v4  ;;  %v4443_v20 = vld [vmem:[%s4744_s1 + $0x98] sm:$0x1]  ;;  %v930_v57 = vmul.f32 %v2631_v10, %v4438_v18  ;;  %v2601_v49 = vld [vmem:[%s4745_s2 + $0x2f0] sm:$0x1]  ;;  %v2705_v55 = vld [vmem:[%s4745_s2 + $0x5a0] sm:$0xff] }
 0x10b   :  { %v3287_v42 = vpack.c.bf16 %v4387_v38, %v4383_v35  ;;  %v4424_v6 = vadd.f32 %v1837_v59, %v1797_v53  ;;  %v970_v63 = vmul.f32 %v2591_v22, %v4443_v20  ;;  %v935_v21 = vmul.f32 %v2636_v54, %v4438_v18  ;;  %v2606_v52 = vld [vmem:[%s4745_s2 + $0x318] sm:$0x1]  ;;  %v2745_v4 = vld [vmem:[%s4745_s2 + $0x6e0] sm:$0xff]  ;;  %v2710_v7 = vld [vmem:[%s4745_s2 + $0x5c8] sm:$0xff] }
 0x10c   :  { %v4427_v8 = vadd.f32 %v1841_v5, %v1801_v61  ;;  %v975_v14 = vmul.f32 %v2596_v51, %v4443_v20  ;;  %v1774_v26 = vmul.f32 %v2735_v28, %v4158_v37  ;;  %v1775_v31 = vmul.f32 %v2736_v29, %v4163_v30  ;;  %v2646_v53 = vld [vmem:[%s4745_s2 + $0x458] sm:$0x1]  ;;  %v2746_v5 = vld [vmem:[%s4745_s2 + $0x6e8] sm:$0xff] }
 0x10d   :  { %v3293_v9 = vpack.c.bf16 %v4424_v6, %v4420_v2  ;;  %v1010_v47 = vadd.f32 %v970_v63, %v930_v57  ;;  %v1814_v13 = vmul.f32 %v2695_v17, %v4168_v34  ;;  %v1815_v39 = vmul.f32 %v2696_v24, %v4175_v46  ;;  %v2711_v57 = vld [vmem:[%s4745_s2 + $0x5d0] sm:$0xff]  ;;  %v2750_v63 = vld [vmem:[%s4745_s2 + $0x708] sm:$0xff]  ;;  %v2689_v2 = vld [vmem:[%s4745_s2 + $0x520] sm:$0x1] }
 0x10e   :  { %v3299_v15 = vpack.c.bf16 %v4431_v60, %v4427_v8  ;;  %v1015_v27 = vadd.f32 %v975_v14, %v935_v21  ;;  %v1779_v40 = vmul.f32 %v2740_v23, %v4158_v37  ;;  %v1780_v41 = vmul.f32 %v2741_v45, %v4163_v30  ;;  %v2751_v21 = vld [vmem:[%s4745_s2 + $0x710] sm:$0xff]  ;;  %v2729_v6 = vld [vmem:[%s4745_s2 + $0x660] sm:$0x1]  ;;  %v2694_v8 = vld [vmem:[%s4745_s2 + $0x548] sm:$0x1] }
 0x10f   :  { %v1819_v43 = vmul.f32 %v2700_v32, %v4168_v34  ;;  %v1820_v44 = vmul.f32 %v2701_v19, %v4175_v46  ;;  %v1049_v59 = vrot.slane %v1010_v47, %v3996_v48  ;;  %v1854_v22 = vadd.f32 %v1814_v13, %v1774_v26  ;;  %v2651_v13 = vld [vmem:[%s4745_s2 + $0x480] sm:$0x1] }
 0x110   :  { %v1053_v61 = vrot.slane %v1015_v27, %v3996_v48  ;;  %v1855_v10 = vadd.f32 %v1815_v39, %v1775_v31  ;;  %v940_v51 = vmul.f32 %v2641_v50, %v4438_v18  ;;  %v980_v54 = vmul.f32 %v2601_v49, %v4443_v20 }
 0x111   :  { %v1859_v14 = vadd.f32 %v1819_v43, %v1779_v40  ;;  %v1860_v17 = vadd.f32 %v1820_v44, %v1780_v41  ;;  %v945_v24 = vmul.f32 %v2646_v53, %v4438_v18  ;;  %v985_v28 = vmul.f32 %v2606_v52, %v4443_v20  ;;  %v2611_v44 = vld [vmem:[%s4745_s2 + $0x340] sm:$0x1] }
 0x112   :  { %v1784_v29 = vmul.f32 %v2745_v4, %v4158_v37  ;;  %v1785_v32 = vmul.f32 %v2746_v5, %v4163_v30  ;;  %v1824_v19 = vmul.f32 %v2705_v55, %v4168_v34  ;;  %v1825_v23 = vmul.f32 %v2706_v58, %v4175_v46  ;;  %v2616_v58 = vld [vmem:[%s4745_s2 + $0x368] sm:$0x1] }
 0x113   :  { %v1789_v47 = vmul.f32 %v2750_v63, %v4158_v37  ;;  %v1790_v27 = vmul.f32 %v2751_v21, %v4163_v30  ;;  %v1829_v26 = vmul.f32 %v2710_v7, %v4168_v34  ;;  %v1830_v31 = vmul.f32 %v2711_v57, %v4175_v46 }
 0x114   :  { %v1020_v43 = vadd.f32 %v980_v54, %v940_v51  ;;  %v3266_v52 = vpack.c.bf16 %v1855_v10, %v1854_v22  ;;  %v3272_v53 = vpack.c.bf16 %v1860_v17, %v1859_v14  ;;  %v1025_v55 = vadd.f32 %v985_v28, %v945_v24  ;;  %v2715_v17 = vld [vmem:[%s4745_s2 + $0x5f0] sm:$0xff]  ;;  %v2716_v28 = vld [vmem:[%s4745_s2 + $0x5f8] sm:$0xff] }
 0x115   :  { %v1864_v5 = vadd.f32 %v1824_v19, %v1784_v29  ;;  %v1865_v7 = vadd.f32 %v1825_v23, %v1785_v32  ;;  %v950_v51 = vmul.f32 %v2651_v13, %v4438_v18  ;;  %v1869_v57 = vadd.f32 %v1829_v26, %v1789_v47  ;;  %v2755_v24 = vld [vmem:[%s4745_s2 + $0x730] sm:$0xff]  ;;  %v2756_v29 = vld [vmem:[%s4745_s2 + $0x738] sm:$0xff]  ;;  %v2721_v26 = vld [vmem:[%s4745_s2 + $0x620] sm:$0xff] }
 0x116   :  { %v990_v22 = vmul.f32 %v2611_v44, %v4443_v20  ;;  %v1057_v10 = vrot.slane %v1020_v43, %v3996_v48  ;;  %v995_v21 = vmul.f32 %v2616_v58, %v4443_v20  ;;  %v1061_v14 = vrot.slane %v1025_v55, %v3996_v48  ;;  %v2760_v32 = vld [vmem:[%s4745_s2 + $0x758] sm:$0xff]  ;;  %v2621_v58 = vld [vmem:[%s4745_s2 + $0x390] sm:$0x1] }
 0x117   :  { %v3278_v23 = vpack.c.bf16 %v1865_v7, %v1864_v5  ;;  %v1794_v43 = vmul.f32 %v2755_v24, %v4158_v37  ;;  %v1834_v44 = vmul.f32 %v2715_v17, %v4168_v34  ;;  %v1799_v55 = vmul.f32 %v2760_v32, %v4158_v37  ;;  %v2666_v5 = vld [vmem:[%s4745_s2 + $0x4f8] sm:$0x1] }
 0x118   :  { %v1030_v47 = vadd.f32 %v990_v22, %v950_v51  ;;  %v1840_v37 = vmul.f32 %v2721_v26, %v4175_v46  ;;  %v1000_v11 = vmul.f32 %v2621_v58, %v4443_v20  ;;  %v965_v51 = vmul.f32 %v2666_v5, %v4438_v18 }
 0x11a   :  { %v1065_v1 = vrot.slane %v1030_v47, %v3996_v48  ;;  %v2684_v47 = vld [vmem:[%s4744_s1 + $0xe8] sm:$0x1] }
 0x11b   :  { %v1813_v26 = vmul.f32 %v2694_v8, %v2684_v47 }
 0x1bd   :  { %v1147_v45 = vpop.f32.mrb[8].mxu0 }
 0x1be   :  { %v1148_v39 = vadd.f32 %v1147_v45, %v1049_v59  ;;  %v2991_v41 = vpop.f32.mrb[9].mxu0  ;;  %v2656_v59 = vld [vmem:[%s4745_s2 + $0x4a8] sm:$0x1] }
 0x1bf   :  { %v1220_v40 = vpop.f32.mrb[8].mxu1  ;;  %v955_v63 = vmul.f32 %v2656_v59, %v4438_v18  ;;  %v2661_v59 = vld [vmem:[%s4745_s2 + $0x4d0] sm:$0x1] }
 0x1c0   :  { %v1221_v49 = vadd.f32 %v1220_v40, %v1053_v61  ;;  %v3002_v50 = vpop.f32.mrb[9].mxu1  ;;  %v1662_v4 = vmax.f32 %v1148_v39, 0.0  ;;  %v1870_v61 = vadd.f32 %v1830_v31, %v1790_v27  ;;  %v2720_v27 = vld [vmem:[%s4745_s2 + $0x618] sm:$0xff]  ;;  %v2761_v31 = vld [vmem:[%s4745_s2 + $0x760] sm:$0xff] }
 0x1c1   :  { %v1035_v41 = vadd.f32 %v995_v21, %v955_v63  ;;  %v1800_v0 = vmul.f32 %v2761_v31, %v4163_v30  ;;  %v1839_v56 = vmul.f32 %v2720_v27, %v4168_v34  ;;  %v1874_v34 = vadd.f32 %v1834_v44, %v1794_v43  ;;  %v2744_v43 = vld [vmem:[%s4745_s2 + $0x6d8] sm:$0x1] }
 0x1c2   :  { %v1663_v54 = vmax.f32 %v1221_v49, 0.0  ;;  %3078 = vmatmul.mubr.msk.f32.vlgmr.msra.gmra.mrb[16].mxu0 %vm260_vm1, %v1662_v4  ;;  %v3284_v45 = vpack.c.bf16 %v1870_v61, %v1869_v57 }
 0x1c3   :  { %3267 = vmatpush3.bf16.msra.mxu0 %v3266_v52  ;;  %3099 = vmatprep.mubr.msk.f32.mxu0 %vm3332_vm0, %v3333_v12  ;;  %v1795_v52 = vmul.f32 %v2756_v29, %v4163_v30  ;;  %v1069_v30 = vrot.slane %v1035_v41, %v3996_v48  ;;  %v1879_v57 = vadd.f32 %v1839_v56, %v1799_v55  ;;  %v2704_v41 = vld [vmem:[%s4745_s2 + $0x598] sm:$0x1] }
 0x1c4   :  { %3089 = vmatmul.mubr.msk.f32.vlgmr.msra.gmra.mrb[16].mxu1 %vm260_vm1, %v1663_v54  ;;  %3268 = vmatprep.subr.bf16.mxu0 %v3331_v3  ;;  %v1880_v61 = vadd.f32 %v1840_v37, %v1800_v0  ;;  %v1823_v55 = vmul.f32 %v2704_v41, %v2684_v47 }
 0x1c5   :  { %3273 = vmatpush3.bf16.msra.mxu1 %v3272_v53  ;;  %v1293_v19 = vpop.f32.mrb[10].mxu0  ;;  %3110 = vmatprep.mubr.msk.f32.mxu1 %vm3332_vm0, %v3333_v12  ;;  %v1835_v53 = vmul.f32 %v2716_v28, %v4175_v46  ;;  %v960_v46 = vmul.f32 %v2661_v59, %v4438_v18 }
 0x1c6   :  { %3274 = vmatprep.subr.bf16.mxu1 %v3331_v3  ;;  %v1294_v13 = vadd.f32 %v1293_v19, %v1057_v10  ;;  %v3013_v40 = vpop.f32.mrb[11].mxu0  ;;  %v3296_v29 = vpack.c.bf16 %v1880_v61, %v1879_v57 }
 0x1c7   :  { %v1366_v39 = vpop.f32.mrb[10].mxu1  ;;  %3270 = vmatpush3.bf16.msra.mxu0 %v3269_v62  ;;  %v2626_v62 = vld [vmem:[%s4745_s2 + $0x3b8] sm:$0x1]  ;;  %v1040_v18 = vadd.f32 %v1000_v11, %v960_v46  ;;  %v2739_v40 = vld [vmem:[%s4745_s2 + $0x6b0] sm:$0x1] }
 0x1c8   :  { %v1367_v49 = vadd.f32 %v1366_v39, %v1061_v14  ;;  %v3024_v50 = vpop.f32.mrb[11].mxu1  ;;  %v1664_v4 = vmax.f32 %v1294_v13, 0.0  ;;  %3277 = vmatprep.subr.bf16.mxu0 %v3331_v3  ;;  %v1005_v54 = vmul.f32 %v2626_v62, %v4443_v20  ;;  %v2699_v39 = vld [vmem:[%s4745_s2 + $0x570] sm:$0x1] }
 0x1c9   :  { %3276 = vmatpush3.bf16.msra.mxu1 %v3275_v16  ;;  %v1875_v16 = vadd.f32 %v1835_v53, %v1795_v52  ;;  %v1073_v19 = vrot.slane %v1040_v18, %v3996_v48  ;;  %v1818_v50 = vmul.f32 %v2699_v39, %v2684_v47 }
 0x1ca   :  { %v1665_v7 = vmax.f32 %v1367_v49, 0.0  ;;  %3283 = vmatprep.subr.bf16.mxu1 %v3331_v3  ;;  %3100 = vmatmul.mubr.msk.f32.vlgmr.msra.gmra.mrb[18].mxu0 %vm260_vm1, %v1664_v4  ;;  %v1045_v24 = vadd.f32 %v1005_v54, %v965_v51 }
 0x1cb   :  { %3279 = vmatpush3.bf16.msra.mxu0 %v3278_v23  ;;  %3121 = vmatprep.mubr.msk.f32.mxu0 %vm3332_vm0, %v3333_v12  ;;  %v3290_v17 = vpack.c.bf16 %v1875_v16, %v1874_v34  ;;  %v2754_v34 = vld [vmem:[%s4745_s2 + $0x728] sm:$0x1] }
 0x1cc   :  { %3111 = vmatmul.mubr.msk.f32.vlgmr.msra.gmra.mrb[18].mxu1 %vm260_vm1, %v1665_v7  ;;  %3280 = vmatprep.subr.bf16.mxu0 %v3331_v3  ;;  %v1077_v25 = vrot.slane %v1045_v24, %v3996_v48  ;;  %v2709_v7 = vld [vmem:[%s4745_s2 + $0x5c0] sm:$0x1]  ;;  %v2759_v24 = vld [vmem:[%s4745_s2 + $0x750] sm:$0x1] }
 0x1cd   :  { %3285 = vmatpush3.bf16.msra.mxu1 %v3284_v45  ;;  %v1439_v22 = vpop.f32.mrb[12].mxu0  ;;  %3132 = vmatprep.mubr.msk.f32.mxu1 %vm3332_vm0, %v3333_v12  ;;  %v1828_v16 = vmul.f32 %v2709_v7, %v2684_v47 }
 0x1ce   :  { %3286 = vmatprep.subr.bf16.mxu1 %v3331_v3  ;;  %v1440_v10 = vadd.f32 %v1439_v22, %v1065_v1  ;;  %v3035_v21 = vpop.f32.mrb[13].mxu0  ;;  %v2749_v1 = vld [vmem:[%s4745_s2 + $0x700] sm:$0x1] }
 0x1cf   :  { %v1512_v63 = vpop.f32.mrb[12].mxu1  ;;  %3282 = vmatpush3.bf16.msra.mxu0 %v3281_v36 }
 0x1d0   :  { %v1513_v14 = vadd.f32 %v1512_v63, %v1069_v30  ;;  %v3046_v20 = vpop.f32.mrb[13].mxu1  ;;  %v1666_v28 = vmax.f32 %v1440_v10, 0.0  ;;  %3289 = vmatprep.subr.bf16.mxu0 %v3331_v3  ;;  %v2714_v30 = vld [vmem:[%s4745_s2 + $0x5e8] sm:$0x1] }
 0x1d1   :  { %3288 = vmatpush3.bf16.msra.mxu1 %v3287_v42  ;;  %v1833_v57 = vmul.f32 %v2714_v30, %v2684_v47 }
 0x1d2   :  { %v1667_v32 = vmax.f32 %v1513_v14, 0.0  ;;  %3295 = vmatprep.subr.bf16.mxu1 %v3331_v3  ;;  %3122 = vmatmul.mubr.msk.f32.vlgmr.msra.gmra.mrb[20].mxu0 %vm260_vm1, %v1666_v28  ;;  %v2724_v28 = vld [vmem:[%s4745_s2 + $0x638] sm:$0x1] }
 0x1d3   :  { %3291 = vmatpush3.bf16.msra.mxu0 %v3290_v17  ;;  %3143 = vmatprep.mubr.msk.f32.mxu0 %vm3332_vm0, %v3333_v12  ;;  %v2719_v17 = vld [vmem:[%s4745_s2 + $0x610] sm:$0x1] }
 0x1d4   :  { %3133 = vmatmul.mubr.msk.f32.vlgmr.msra.gmra.mrb[20].mxu1 %vm260_vm1, %v1667_v32  ;;  %3292 = vmatprep.subr.bf16.mxu0 %v3331_v3 }
 0x1d5   :  { %3297 = vmatpush3.bf16.msra.mxu1 %v3296_v29  ;;  %v1585_v33 = vpop.f32.mrb[14].mxu0  ;;  %3154 = vmatprep.mubr.msk.f32.mxu1 %vm3332_vm0, %v3333_v12  ;;  %v2679_v12 = vld [vmem:[%s4744_s1 + $0xc0] sm:$0x1]  ;;  %v2764_v29 = vld [vmem:[%s4745_s2 + $0x778] sm:$0x1] }
 0x1d6   :  { %3298 = vmatprep.subr.bf16.mxu1 %v3331_v3  ;;  %v1586_v35 = vadd.f32 %v1585_v33, %v1073_v19  ;;  %v3057_v38 = vpop.f32.mrb[15].mxu0  ;;  %v1768_v60 = vmul.f32 %v2729_v6, %v2679_v12  ;;  %v1778_v49 = vmul.f32 %v2739_v40, %v2679_v12  ;;  %v1783_v53 = vmul.f32 %v2744_v43, %v2679_v12 }
 0x1d7   :  { %v1658_v36 = vpop.f32.mrb[14].mxu1  ;;  %3294 = vmatpush3.bf16.msra.mxu0 %v3293_v9  ;;  %v2734_v9 = vld [vmem:[%s4745_s2 + $0x688] sm:$0x1]  ;;  %v1788_v11 = vmul.f32 %v2749_v1, %v2679_v12  ;;  %v1793_v54 = vmul.f32 %v2754_v34, %v2679_v12  ;;  %v1798_v19 = vmul.f32 %v2759_v24, %v2679_v12  ;;  %s3334_s2 = smov [#allocation2]  }
 0x1d8   :  { %v1659_v42 = vadd.f32 %v1658_v36, %v1077_v25  ;;  %v3068_v23 = vpop.f32.mrb[15].mxu1  ;;  %v1668_v45 = vmax.f32 %v1586_v35, 0.0  ;;  %v1773_v27 = vmul.f32 %v2734_v9, %v2679_v12  ;;  %v1858_v56 = vadd.f32 %v1818_v50, %v1778_v49  ;;  %s2513_s23 = sshll.u32 %s3334_s2, 4  ;;  %s2514_s23 = int_to_ptr.vmem [resolvable:$true] %s2513_s23 }
 0x1d9   :  { %3300 = vmatpush3.bf16.msra.mxu1 %v3299_v15  ;;  %v1808_v15 = vmul.f32 %v2689_v2, %v2684_v47  ;;  %v1863_v5 = vadd.f32 %v1823_v55, %v1783_v53  ;;  %v1868_v21 = vadd.f32 %v1828_v16, %v1788_v11  ;;  %v1873_v20 = vadd.f32 %v1833_v57, %v1793_v54  ;;  %s3307_s24 = scalar_lea.vmem %s2514_s23, 1024  ;;  %p3312_p1 = scmp.lt.s32.totalorder %s2514_s23, %s2514_s23 }
 0x1da   :  { %v1669_v3 = vmax.f32 %v1659_v42, 0.0  ;;  %3144 = vmatmul.mubr.msk.f32.vlgmr.msra.gmra.mrb[22].mxu0 %vm260_vm1, %v1668_v45  ;;  %v1853_v13 = vadd.f32 %v1813_v26, %v1773_v27  ;;  %v1895_v46 = vrot.slane %v1858_v56, %v3996_v48  ;;  %v1838_v25 = vmul.f32 %v2719_v17, %v2684_v47  ;;  %p3308_p0 = scmp.ne.s32.totalorder %s2514_s23, %s3307_s24  ;;  %p3313_p2 = scmp.lt.s32.totalorder %s3307_s24, %s3307_s24 }
 0x1db   :  { %v1848_v31 = vadd.f32 %v1808_v15, %v1768_v60  ;;  %v1899_v51 = vrot.slane %v1863_v5, %v3996_v48  ;;  %v1903_v32 = vrot.slane %v1868_v21, %v3996_v48  ;;  %v1907_v33 = vrot.slane %v1873_v20, %v3996_v48 }
 0x1dc   :  { %3155 = vmatmul.mubr.msk.f32.vlgmr.msra.gmra.mrb[22].mxu1 %vm260_vm1, %v1669_v3  ;;  %v1891_v52 = vrot.slane %v1853_v13, %v3996_v48  ;;  %v1803_v35 = vmul.f32 %v2764_v29, %v2679_v12  ;;  %v1843_v36 = vmul.f32 %v2724_v28, %v2684_v47  ;;  %v1878_v3 = vadd.f32 %v1838_v25, %v1798_v19  ;;  %p3314_p3 = por %p3313_p2, %p3312_p1 }
 0x1dd   :  { %v1887_v44 = vrot.slane %v1848_v31, %v3996_v48 }
 0x1de   :  { %v1883_v8 = vadd.f32 %v1843_v36, %v1803_v35  ;;  %v1911_v9 = vrot.slane %v1878_v3, %v3996_v48  ;;  %p3315_p4 = pnand %p3314_p3, %p3308_p0 }
 0x1e0   :  { %v1915_v60 = vrot.slane %v1883_v8, %v3996_v48 }
 0x295   :  { %v1985_v58 = vpop.f32.mrb[16].mxu0 }
 0x296   :  { %v1986_v59 = vadd.f32 %v1985_v58, %v1887_v44  ;;  %v3079_v0 = vpop.f32.mrb[17].mxu0 }
 0x297   :  { %v2058_v4 = vpop.f32.mrb[16].mxu1 }
 0x298   :  { %v2059_v37 = vadd.f32 %v2058_v4, %v1891_v52  ;;  %v3090_v62 = vpop.f32.mrb[17].mxu1  ;;  %2500 = vst.msk [vmem:[#allocation2] sm:$0xff] %vm260_vm1, %v1986_v59 }
 0x29a   :  { %2501 = vst.msk [vmem:[#allocation2 + $0x8] sm:$0xff] %vm260_vm1, %v2059_v37 }
 0x29d   :  { %v2131_v61 = vpop.f32.mrb[18].mxu0 }
 0x29e   :  { %v2132_v22 = vadd.f32 %v2131_v61, %v1895_v46  ;;  %v3101_v63 = vpop.f32.mrb[19].mxu0 }
 0x29f   :  { %v2204_v10 = vpop.f32.mrb[18].mxu1 }
 0x2a0   :  { %v2205_v18 = vadd.f32 %v2204_v10, %v1899_v51  ;;  %v3112_v14 = vpop.f32.mrb[19].mxu1  ;;  %2502 = vst.msk [vmem:[#allocation2 + $0x10] sm:$0xff] %vm260_vm1, %v2132_v22 }
 0x2a2   :  { %2503 = vst.msk [vmem:[#allocation2 + $0x18] sm:$0xff] %vm260_vm1, %v2205_v18 }
 0x2a5   :  { %v2277_v38 = vpop.f32.mrb[20].mxu0 }
 0x2a6   :  { %v2278_v42 = vadd.f32 %v2277_v38, %v1903_v32  ;;  %v3123_v45 = vpop.f32.mrb[21].mxu0 }
 0x2a7   :  { %v2350_v23 = vpop.f32.mrb[20].mxu1 }
 0x2a8   :  { %v2351_v2 = vadd.f32 %v2350_v23, %v1907_v33  ;;  %v3134_v6 = vpop.f32.mrb[21].mxu1  ;;  %2504 = vst.msk [vmem:[#allocation2 + $0x20] sm:$0xff] %vm260_vm1, %v2278_v42 }
 0x2aa   :  { %2505 = vst.msk [vmem:[#allocation2 + $0x28] sm:$0xff] %vm260_vm1, %v2351_v2 }
 0x2ad   :  { %v2423_v12 = vpop.f32.mrb[22].mxu0 }
 0x2ae   :  { %v2424_v47 = vadd.f32 %v2423_v12, %v1911_v9  ;;  %v3145_v27 = vpop.f32.mrb[23].mxu0 }
 0x2af   :  { %v2496_v15 = vpop.f32.mrb[22].mxu1 }
 0x2b0   :  { %v2497_v26 = vadd.f32 %v2496_v15, %v1915_v60  ;;  %v3156_v31 = vpop.f32.mrb[23].mxu1  ;;  %2506 = vst.msk [vmem:[#allocation2 + $0x30] sm:$0xff] %vm260_vm1, %v2424_v47 }
 0x2b2   :  { %2507 = vst.msk [vmem:[#allocation2 + $0x38] sm:$0xff] %vm260_vm1, %v2497_v26 }
 0x2b3   :  { %3318 = shalt.err (!%p3315_p4)
}
 0x2b4   :  { %s3319_s27 = scalar_lea.hbm %s4746_s3, 1024 }
 0x2b5   :  { %p3320_p5 = scmp.ne.s32.totalorder %s4746_s3, %s3319_s27  ;;  %p3323_p6 = scmp.lt.u32.totalorder %s3319_s27, %s4746_s3 }
 0x2b7   :  { %p3325_p7 = pnand %p3323_p6, %p3320_p5 }
 0x2b9   :  { %3328 = shalt.err (!%p3325_p7)
}
 0x2ba   :  { %s3335_s4 = smov 128   ;;  %s3336_s5 = smov 8  }
 0x2bb   :  { %2519 = dma.vmem_to_hbm [thread:$0]  %s2514_s23, 1024, %s4746_s3, [#allocation3], %s3335_s4, %s3335_s4, %s3336_s5  }
 0x2bc   :  { %3329 = dma.done.wait [#allocation3], 1024  }
 0x2bd   :  { %3330 = vsyncadd [#allocation3], 4294966272 }
 0x2be   :  { %2523 = vsyncpa [#allocation3], 1 }

</bundles_post_ra>
